<compile_context>
chip_gen: v7x
topology: tpu7x:2x2x1
jax: 0.10.0
libtpu: 0.0.40
codegen_flags: <defaults>
</compile_context>

<pallas_src>
import jax
import jax.numpy as jnp
from jax.experimental import pallas as pl
from jax.experimental.pallas import tpu as pltpu

IN_FEATURES = 784   # flattened 28x28 MNIST image, as in the GAN script
HIDDEN = 128
OUT = 1


def _round_up(n, m):
    return pl.cdiv(n, m) * m


def _pick_bm(batch, bm_max=1024):
    """Batch-tile rows: multiple of 8, aim for >= 2 grid steps (v7x megacore),
    capped so the double-buffered f32 x tile fits default scoped VMEM on
    v5e/v6e/v7x without raising vmem_limit_bytes."""
    target = _round_up(max(pl.cdiv(batch, 2), 1), 8)
    return max(8, min(bm_max, target))


def disc_kernel(x_ref, w1_ref, b1_ref, w2_ref, b2_ref, o_ref):
    # ---- Layer 1: Linear(in_features -> 128) + LeakyReLU(0.1) ----
    # In-kernel bf16 cast for MXU-rate matmul; accumulate in f32.
    x = x_ref[...].astype(jnp.bfloat16)
    w1 = w1_ref[...].astype(jnp.bfloat16)
    h = jnp.dot(x, w1, preferred_element_type=jnp.float32) + b1_ref[...]
    h = jnp.maximum(h, 0.1 * h)                       # LeakyReLU(0.1), one VPU op
    # ---- Layer 2: Linear(128 -> 1) + Sigmoid ----
    # 127/128 of an MXU matmul here would be padding; use VPU mul + lane reduce.
    y = jnp.sum(h * w2_ref[...], axis=-1, keepdims=True) + b2_ref[0]
    # sigmoid(y) = 1 / (1 + exp(-y)); exp and approx reciprocal both go to EUP.
    o_ref[...] = pl.reciprocal(1.0 + jnp.exp(-y), approx=True).astype(o_ref.dtype)


def disc_forward(x, w1, b1, w2, b2, *, bm=None):
    """Discriminator forward: sigmoid(leaky_relu(x @ w1 + b1, 0.1) @ w2 + b2).

    x:  (B, in_features) f32 (or bf16)
    w1: (in_features, 128)   -- torch Linear weight, transposed
    b1: (128,) or (1, 128)
    w2: (128, 1)             -- torch Linear weight, transposed
    b2: (1,) or (1, 1)
    Returns (B, 1) f32.
    """
    B, K = x.shape
    Kw, H = w1.shape
    assert K == Kw
    Hw, O = w2.shape
    assert Hw == H and O == OUT

    if bm is None:
        bm = _pick_bm(B)
    assert bm % 8 == 0, "batch tile must be a multiple of 8 (sublane width)"

    # Only trivial reshape plumbing — no padded copies, no standalone cast pass.
    w1 = jnp.asarray(w1, jnp.float32)
    b1 = jnp.asarray(b1, jnp.float32).reshape(1, H)
    w2_row = jnp.asarray(w2, jnp.float32).reshape(1, H)   # (128,1) -> (1,128)
    b2 = jnp.asarray(b2, jnp.float32).reshape(1,)         # scalar in SMEM

    grid = (pl.cdiv(B, bm),)   # partial last tile: OOB rows masked on writeback

    cost = pl.CostEstimate(
        flops=2 * B * K * H + 2 * B * H,
        transcendentals=B,   # one exp per sigmoid output
        bytes_accessed=(B * K * x.dtype.itemsize   # x read
                        + K * H * 4                # W1 read (resident)
                        + (2 * H + 1) * 4          # b1, w2 row, b2
                        + B * 4),                  # (B, 1) output
    )

    return pl.pallas_call(
        disc_kernel,
        out_shape=jax.ShapeDtypeStruct((B, O), jnp.float32),
        grid_spec=pltpu.PrefetchScalarGridSpec(
            num_scalar_prefetch=0,
            grid=grid,
            in_specs=[
                pl.BlockSpec((bm, K), lambda i: (i, 0)),   # x batch tile, unpadded
                pl.BlockSpec((K, H), lambda i: (0, 0)),    # W1, resident in VMEM
                pl.BlockSpec((1, H), lambda i: (0, 0)),    # b1, resident
                pl.BlockSpec((1, H), lambda i: (0, 0)),    # w2 row, resident
                pl.BlockSpec(memory_space=pltpu.MemorySpace.SMEM),  # b2 scalar
            ],
            out_specs=pl.BlockSpec((bm, O), lambda i: (i, 0)),
        ),
        compiler_params=pltpu.CompilerParams(
            dimension_semantics=("parallel",),
        ),
        cost_estimate=cost,
    )(x, w1, b1, w2_row, b2)


def reference_forward(x, w1, b1, w2, b2):
    h = x @ w1 + b1.reshape(1, -1)
    h = jnp.where(h > 0, h, 0.1 * h)          # LeakyReLU(0.1)
    y = h @ w2 + b2.reshape(1, -1)
    return 1.0 / (1.0 + jnp.exp(-y))          # Sigmoid


if __name__ == "__main__":
    key = jax.random.PRNGKey(0)
    kx, k1, k2, k3, k4 = jax.random.split(key, 5)

    # Small, MNIST-discriminator-shaped problem. B=200 is deliberately not a
    # multiple of the batch tile -> exercises the partial last grid step.
    B = 200
    s1 = 1.0 / (IN_FEATURES ** 0.5)
    s2 = 1.0 / (HIDDEN ** 0.5)
    x = jax.random.normal(kx, (B, IN_FEATURES), jnp.float32)
    w1 = jax.random.uniform(k1, (IN_FEATURES, HIDDEN), jnp.float32, -s1, s1)
    b1 = jax.random.uniform(k2, (HIDDEN,), jnp.float32, -s1, s1)
    w2 = jax.random.uniform(k3, (HIDDEN, OUT), jnp.float32, -s2, s2)
    b2 = jax.random.uniform(k4, (OUT,), jnp.float32, -s2, s2)

    fwd = jax.jit(disc_forward)
    out = jax.block_until_ready(fwd(x, w1, b1, w2, b2))

    ref = reference_forward(x, w1, b1, w2, b2)
    assert out.shape == (B, OUT)
    # bf16 MXU operands (f32 accumulation) -> relaxed tolerance vs f32 reference.
    err = float(jnp.max(jnp.abs(out - ref)))
    assert err < 2e-2, err

    print("KERNEL_OK")
</pallas_src>

<mosaic_0001>
module attributes {stable_mosaic.version = 11 : i64} {
  func.func @disc_kernel(%arg0: i32, %arg1: memref<104x784xf32, #tpu.memory_space<vmem>>, %arg2: memref<784x128xf32, #tpu.memory_space<vmem>>, %arg3: memref<1x128xf32, #tpu.memory_space<vmem>>, %arg4: memref<1x128xf32, #tpu.memory_space<vmem>>, %arg5: memref<1xf32, #tpu.memory_space<smem>>, %arg6: memref<104x1xf32, #tpu.memory_space<vmem>>) attributes {dimension_semantics = [#tpu.dimension_semantics<parallel>], iteration_bounds = array<i64: 2>, scalar_prefetch = 0 : i64, scratch_operands = 0 : i64, tpu.core_type = #tpu.core_type<tc>, window_params = [{transform_indices = @transform_0, window_bounds = array<i64: 104, 784>}, {pipeline_mode = #tpu.pipeline_mode<synchronous>, transform_indices = @transform_1, window_bounds = array<i64: 784, 128>}, {pipeline_mode = #tpu.pipeline_mode<synchronous>, transform_indices = @transform_2, window_bounds = array<i64: 1, 128>}, {pipeline_mode = #tpu.pipeline_mode<synchronous>, transform_indices = @transform_3, window_bounds = array<i64: 1, 128>}, {transform_indices = @transform_4, window_bounds = array<i64: 1>}, {transform_indices = @transform_5, window_bounds = array<i64: 104, 1>}]} {
    %c0 = arith.constant 0 : index
    %c0_0 = arith.constant 0 : index
    %0 = vector.load %arg1[%c0, %c0_0] : memref<104x784xf32, #tpu.memory_space<vmem>>, vector<104x784xf32>
    %1 = arith.truncf %0 : vector<104x784xf32> to vector<104x784xbf16>
    %c0_1 = arith.constant 0 : index
    %c0_2 = arith.constant 0 : index
    %2 = vector.load %arg2[%c0_1, %c0_2] : memref<784x128xf32, #tpu.memory_space<vmem>>, vector<784x128xf32>
    %3 = arith.truncf %2 : vector<784x128xf32> to vector<784x128xbf16>
    %cst = arith.constant dense<0.000000e+00> : vector<104x128xf32>
    %4 = tpu.matmul %1, %3, %cst {dimension_numbers = #tpu.dot_dimension_numbers<[1], [0], [0], [1], [0, 0, 1, 1], [], []>} : vector<104x784xbf16>, vector<784x128xbf16>, vector<104x128xf32> -> vector<104x128xf32>
    %c0_3 = arith.constant 0 : index
    %c0_4 = arith.constant 0 : index
    %5 = vector.load %arg3[%c0_3, %c0_4] : memref<1x128xf32, #tpu.memory_space<vmem>>, vector<1x128xf32>
    %6 = vector.broadcast %5 : vector<1x128xf32> to vector<104x128xf32>
    %7 = arith.addf %4, %6 : vector<104x128xf32>
    %cst_5 = arith.constant 1.000000e-01 : f32
    %8 = vector.broadcast %cst_5 : f32 to vector<104x128xf32>
    %9 = arith.mulf %8, %7 : vector<104x128xf32>
    %10 = arith.maximumf %7, %9 : vector<104x128xf32>
    %c0_6 = arith.constant 0 : index
    %c0_7 = arith.constant 0 : index
    %11 = vector.load %arg4[%c0_6, %c0_7] : memref<1x128xf32, #tpu.memory_space<vmem>>, vector<1x128xf32>
    %12 = vector.broadcast %11 : vector<1x128xf32> to vector<104x128xf32>
    %13 = arith.mulf %10, %12 : vector<104x128xf32>
    %cst_8 = arith.constant dense<0.000000e+00> : vector<104xf32>
    %14 = vector.multi_reduction <add>, %13, %cst_8 [1] : vector<104x128xf32> to vector<104xf32>
    %15 = vector.shape_cast %14 : vector<104xf32> to vector<104x1xf32>
    %c0_9 = arith.constant 0 : index
    %16 = memref.load %arg5[%c0_9] : memref<1xf32, #tpu.memory_space<smem>>
    %17 = vector.broadcast %16 : f32 to vector<104x1xf32>
    %18 = arith.addf %15, %17 : vector<104x1xf32>
    %cst_10 = arith.constant 0.000000e+00 : f32
    %19 = vector.broadcast %cst_10 : f32 to vector<104x1xf32>
    %20 = arith.subf %19, %18 : vector<104x1xf32>
    %21 = math.exp %20 : vector<104x1xf32>
    %cst_11 = arith.constant 1.000000e+00 : f32
    %22 = vector.broadcast %cst_11 : f32 to vector<104x1xf32>
    %23 = arith.addf %22, %21 : vector<104x1xf32>
    %24 = tpu.reciprocal %23 {approx = true} : vector<104x1xf32> -> vector<104x1xf32>
    %c0_12 = arith.constant 0 : index
    %c0_13 = arith.constant 0 : index
    %25 = vector.load %arg6[%c0_12, %c0_13] : memref<104x1xf32, #tpu.memory_space<vmem>>, vector<104x1xf32>
    tpu.vector_store %arg6[%c0_12, %c0_13], %24 {strides = array<i32>} : memref<104x1xf32, #tpu.memory_space<vmem>>, vector<104x1xf32>,
    return
  }
  func.func @transform_0(%arg0: i32) -> (i32, i32) {
    %c0_i32 = arith.constant 0 : i32
    %c0_i32_0 = arith.constant 0 : i32
    return %arg0, %c0_i32 : i32, i32
  }
  func.func @transform_1(%arg0: i32) -> (i32, i32) {
    %c0_i32 = arith.constant 0 : i32
    %c0_i32_0 = arith.constant 0 : i32
    %c0_i32_1 = arith.constant 0 : i32
    return %c0_i32, %c0_i32_0 : i32, i32
  }
  func.func @transform_2(%arg0: i32) -> (i32, i32) {
    %c0_i32 = arith.constant 0 : i32
    %c0_i32_0 = arith.constant 0 : i32
    %c0_i32_1 = arith.constant 0 : i32
    return %c0_i32, %c0_i32_0 : i32, i32
  }
  func.func @transform_3(%arg0: i32) -> (i32, i32) {
    %c0_i32 = arith.constant 0 : i32
    %c0_i32_0 = arith.constant 0 : i32
    %c0_i32_1 = arith.constant 0 : i32
    return %c0_i32, %c0_i32_0 : i32, i32
  }
  func.func @transform_4(%arg0: i32) -> i32 {
    %c0_i32 = arith.constant 0 : i32
    %c0_i32_0 = arith.constant 0 : i32
    return %c0_i32 : i32
  }
  func.func @transform_5(%arg0: i32) -> (i32, i32) {
    %c0_i32 = arith.constant 0 : i32
    %c0_i32_0 = arith.constant 0 : i32
    return %arg0, %c0_i32 : i32, i32
  }
}

</mosaic_0001>

<bundles_post_ra>
// kernel: disc_forward.1
= control target key start
LH: loop header
LB: loop body
LE: loop exit
PB: predicated region body
PF: predicated region fallthrough
CT: control target
= control target key end

     0   :  { %s2483_s0 = inlined_call_operand.hbm [shape: f32[200,784], index: 0, kind: input, shape index: {}]   ;;  %s2484_s1 = inlined_call_operand.hbm [shape: f32[784,128], index: 1, kind: input, shape index: {}]   ;;  %s2485_s2 = inlined_call_operand.vmem [shape: f32[1,128], index: 2, kind: input, shape index: {}]   ;;  %s2486_s3 = inlined_call_operand.vmem [shape: f32[1,128], index: 3, kind: input, shape index: {}]   ;;  %s2487_s4 = inlined_call_operand.<no memory space> [shape: f32[1], index: 4, kind: input, shape index: {}]   ;;  %s2488_s5 = inlined_call_operand.vmem [shape: f32[200,1], index: 5, kind: output, shape index: {}]  }
   0x1   :  { %10 = sst [smem:[#allocation2]] %s2487_s4 }
   0x2   :  { %11 = vsyncpa [#allocation4], 0 }
   0x3   :  { %13 = vsyncpa [#allocation4 + $0x1], 0 }
   0x4   :  { %14 = vsyncpa [#allocation6], 0  ;;  %s2017_s20 = smov 0   ;;  %s2019_s21 = smov 0  }
   0x5   :  { %s2021_s22 = smov 0   ;;  %s2023_s23 = smov 0  }
   0x6 LB: > { %s2036_s4 = sadd.s32 4294967295, %s1942_s23   ;;  %s2039_s24 = sadd.s32 1, %s1942_s23   ;;  %s1942_s23 = sphi %s2023_s23, %s2509_s23   ;;  %s1938_s22 = sphi %s2021_s22, %s2508_s22   ;;  %s1934_s21 = sphi %s2019_s21, %s2507_s21   ;;  %s1930_s20 = sphi %s2017_s20, %s2506_s20  }
   0x7   : > { %s24_s25 = ssub.s32 %s1942_s23, %s2039_s24  ;;  %s27_s26 = sadd.s32 1, %s1938_s22 }
   0x8   : > { %p25_p0 = scmp.eq.s32.totalorder %s24_s25, 0  ;;  %p34_p1 = scmp.ne.s32.totalorder %s1938_s22, %s1934_s21 }
   0x9   : > { %p35_p2 = scmp.eq.s32.totalorder %s1942_s23, 0  ;;  %p40_p3 = scmp.ne.s32.totalorder %s1934_s21, %s1930_s20 }
   0xa   : > { %s2049_s27 = scalar_select %p25_p0, %s1938_s22, %s27_s26  }
   0xb   : > { %p2051_p4 = por %p35_p2, %p34_p1  ;;  %p2489_p5 = scmp.eq.s32.totalorder %s2036_s4, 0 }
   0xc   : > { %p148_p6 = scmp.eq.s32.totalorder %s2036_s4, 1  ;;  %p1396_p7 = scmp.ge.s32.totalorder %s1942_s23, 1 }
   0xd   : > { %s2492_s28 = scalar_select %p2051_p4, 1, 0 }
   0xe   : > { %p2060_p8 = por %p2489_p5, %p40_p3  ;;  %p161_p9 = scmp.lt.s32.totalorder %s1942_s23, 3 }
   0xf   : > { %p2065_p10 = por %p148_p6, %p34_p1  ;;  %s1976_s7 = smov [#allocation5]  }
  0x10   : > { %s2493_s29 = scalar_select %p2060_p8, 1, 0 }
  0x11   : > { %s2494_s30 = scalar_select %p2065_p10, 1, 0 }
  0x12   : > { %p2069_p11 = pnand %p1396_p7, %p161_p9  ;;  %s173_s8 = sshll.u32 %s1976_s7, 4  ;;  %s174_s8 = int_to_ptr.vmem [resolvable:$true] %s173_s8 }
  0x13   : > { %s1816_s12 = scalar_lea.hbm %s2484_s1, 12544 }
  0x14   : > { %s2495_s6 = scalar_select %p2069_p11, 1, 0 }
  0x15   : > { %p1649_p12 = pneg %p2069_p11  ;;  %p1817_p0 = scmp.ne.s32.totalorder %s2484_s1, %s1816_s12 }
  0x16   : > { %p1823_p6 = scmp.lt.u32.totalorder %s1816_s12, %s2484_s1 }
  0x17   : > { %p2077_p13 = pnand %p1649_p12, %p2489_p5 }
  0x19   : > { %p1818_p1 = pneg %p2077_p13 }
  0x1b   : > { %p1819_p2 = pnand %p1818_p1, %p1817_p0 }
  0x1d   : > { %p1820_p3 = pneg %p1819_p2 }
  0x1f   : > { %p1825_p7 = pnand %p1823_p6, %p1820_p3 }
  0x21   : > { %1828 = shalt.err (!%p1825_p7)
}
  0x22   : > { %s1829_s17 = scalar_lea.vmem %s174_s8, 12544  ;;  %p1837_p10 = scmp.lt.s32.totalorder %s174_s8, %s174_s8 }
  0x23   : > { %p1830_p9 = scmp.ne.s32.totalorder %s174_s8, %s1829_s17  ;;  %p1838_p8 = scmp.lt.s32.totalorder %s1829_s17, %s1829_s17 }
  0x25   : > { %p1832_p12 = pnand %p1830_p9, %p1818_p1  ;;  %p1839_p11 = por %p1838_p8, %p1837_p10 }
  0x27   : > { %p1833_p5 = pneg %p1832_p12 }
  0x29   : > { %p1840_p4 = pnand %p1839_p11, %p1833_p5 }
  0x2b   : > { %1843 = shalt.err (!%p1840_p4)
}
  0x2c   : > { %s1977_s18 = smov 128   ;;  %s1978_s19 = smov 8  }
  0x2d   : > { %1652 = dma.hbm_to_vmem [thread:$0]  (!%p2077_p13), %s2484_s1, 12544, %s174_s8, [#allocation6], %s1977_s18, %s1977_s18, %s1978_s19  }
  0x2e   : > { %p1398_p0 = scmp.ge.s32.totalorder %s1942_s23, 2 }
  0x2f   : > { %p2497_p2 = scmp.ne.s32.totalorder (!%p1398_p0), %s2492_s28, 0 }
  0x30   : > { %192 = sbr.rel (%p1398_p0) target bundleno = 91 (0x5b), region = 32 }
  0x37   : > { %195 = sbr.rel (!%p2497_p2) target bundleno = 91 (0x5b), region = 36  ;;  %s196_s26 = sand.u32 (%p2497_p2), 1, %s1938_s22  }
  0x38   : > { %s201_s7 = smul.u32 (%p2497_p2), 13, %s1942_s23  ;;  %s2105_s13 = scalar_lea.sflag (%p2497_p2), [#allocation4], %s196_s26 }
  0x39   : > { %s1640_s10 = smul.u32 (%p2497_p2), 728, %s196_s26 }
  0x3a   : > { %s202_s11 = ssub.s32 (%p2497_p2), 25, %s201_s7 }
  0x3b   : > { %p203_p4 = scmp.lt.s32.totalorder (%p2497_p2), %s202_s11, 13  ;;  %s200_s8 = scalar_lea.vmem (%p2497_p2), [#allocation3], %s1640_s10 }
  0x3e   : > { %s2511_s11 = smov (!%p203_p4, %s202_s11), 13 }
  0x3f   : > { %s2102_s12 = smul.u32 896, %s2511_s11 }
  0x41   : > { %s208_s9 = ssub.s32 11648, %s2102_s12 }
  0x42   : > { %209 = vsyncadd %s2105_s13, %s208_s9  ;;  %p1401_p5 = scmp.ne.s32.totalorder %s2102_s12, 0  ;;  %s1654_s28 = smul.u32 11648, %s1942_s23 }
  0x43   : > { %s215_s14 = sshll.u32 %s200_s8, 4  ;;  %s1848_s23 = scalar_lea.hbm %s2483_s0, 22400  ;;  %s2115_s14 = int_to_ptr.vmem [resolvable:$true] %s215_s14 }
  0x44   : > { %s2113_s17 = scalar_lea.hbm %s2483_s0, %s1654_s28 }
  0x45   : > { %s1844_s18 = scalar_lea.hbm %s2113_s17, %s2102_s12  ;;  %p1849_p13 = scmp.lt.u32.totalorder %s2113_s17, %s2483_s0 }
  0x46   : > { %p1845_p8 = scmp.ne.s32.totalorder %s2113_s17, %s1844_s18  ;;  %p1850_p1 = scmp.lt.u32.totalorder %s1848_s23, %s1844_s18 }
  0x47   : > { %p1852_p6 = scmp.lt.u32.totalorder %s1844_s18, %s2113_s17 }
  0x48   : > { %p1846_p10 = pnand %p1845_p8, %p1401_p5  ;;  %p1851_p3 = por %p1850_p1, %p1849_p13 }
  0x4a   : > { %p1847_p11 = pneg %p1846_p10  ;;  %p1853_p7 = por %p1852_p6, %p1851_p3 }
  0x4c   : > { %p1854_p9 = pnand %p1853_p7, %p1847_p11 }
  0x4e   : > { %1857 = shalt.err (!%p1854_p9)
}
  0x4f   : > { %s1858_s7 = scalar_lea.vmem %s2115_s14, %s2102_s12  ;;  %s1979_s10 = smov [#allocation3]  }
  0x50   : > { %p1859_p12 = scmp.ne.s32.totalorder %s2115_s14, %s1858_s7  ;;  %s1862_s11 = sshll.u32 %s1979_s10, 4  ;;  %s1863_s11 = int_to_ptr.vmem [resolvable:$false] %s1862_s11 }
  0x51   : > { %s1864_s9 = scalar_lea.vmem %s1863_s11, 23296  ;;  %p1865_p4 = scmp.lt.s32.totalorder %s2115_s14, %s1863_s11 }
  0x52   : > { %p1860_p0 = pnand %p1859_p12, %p1401_p5  ;;  %p1866_p8 = scmp.lt.s32.totalorder %s1864_s9, %s1858_s7 }
  0x54   : > { %p1861_p2 = pneg %p1860_p0  ;;  %p1867_p10 = por %p1866_p8, %p1865_p4 }
  0x56   : > { %p1868_p13 = pnand %p1867_p10, %p1861_p2 }
  0x58   : > { %1871 = shalt.err (!%p1868_p13)
}
  0x59   : > { %s1980_s8 = smov 896   ;;  %s1981_s28 = smov 56  }
  0x5a   : > { %221 = dma.hbm_to_vmem [thread:$0]  (%p1401_p5), %s2113_s17, %s2102_s12, %s2115_s14, %s2105_s13, %s1980_s8, %s1980_s8, %s1981_s28  }
  0x5b PF: > { %p2498_p11 = scmp.ne.s32.totalorder %s2495_s6, 0 }
  0x5c   : > { %s2145_s15 = sand.u32 (!%p2498_p11), 1, %s1934_s21   ;;  %p2499_p1 = scmp.ne.s32.totalorder (!%p2498_p11), %s2493_s29, 0 }
  0x5d   : > { %227 = sbr.rel (%p2498_p11) target bundleno = 702 (0x2be), region = 40  ;;  %s230_s18 = scalar_lea.sflag (!%p2498_p11), [#allocation4], %s2145_s15 }
  0x5e   : > { %s1642_s16 = smul.u32 (!%p2498_p11), 728, %s2145_s15 }
  0x60   : > { %s2149_s19 = scalar_lea.vmem (!%p2498_p11), [#allocation3], %s1642_s16 }
  0x64   : > { %1921 = dma.done.wait (%p2499_p1), %s230_s18, 11648  }
  0x65   : > { %1923 = vsyncadd (%p2499_p1), %s230_s18, 4294955648  ;;  %p2500_p5 = scmp.eq.s32.totalorder %s2036_s4, 0 }
  0x67   : > { %1925 = dma.done.wait (%p2500_p5), [#allocation6], 12544   ;;  %p2501_p3 = pmov %p2500_p5 }
  0x68   : > { %v431_v0 = vld [vmem:[#allocation5 + $0x80] sm:$0xff]  ;;  %v432_v1 = vld [vmem:[#allocation5 + $0x88] sm:$0xff]  ;;  %v433_v11 = vld [vmem:[#allocation5 + $0x90] sm:$0xff]  ;;  %vm1983_vm0 = vmmov 0   ;;  %vm569_vm1 = vcmask 130048   ;;  %s1015_s14 = sld [smem:[#allocation2]] }
  0x69   : > { %1927 = vsyncadd (%p2501_p3), [#allocation6], 4294954752  ;;  %v415_v2 = vld [vmem:[#allocation5] sm:$0xff]  ;;  %v521_v3 = vpack.c.bf16 %v432_v1, %v431_v0  ;;  %v416_v4 = vld [vmem:[#allocation5 + $0x8] sm:$0xff]  ;;  %s1643_s17 = smul.u32 104, %s2145_s15  ;;  %vm1095_vm2 = vcmask 7168  }
  0x6a   : > { %v463_v5 = vld [vmem:[#allocation5 + $0x180] sm:$0xff]  ;;  %v464_v6 = vld [vmem:[#allocation5 + $0x188] sm:$0xff]  ;;  %v513_v7 = vpack.c.bf16 %v416_v4, %v415_v2  ;;  %v434_v13 = vld [vmem:[#allocation5 + $0x98] sm:$0xff]  ;;  %p2502_p6 = scmp.ne.s32.totalorder %s2494_s30, 0 }
  0x6b   : > { %v537_v8 = vpack.c.bf16 %v464_v6, %v463_v5  ;;  %v447_v9 = vld [vmem:[#allocation5 + $0x100] sm:$0xff]  ;;  %v448_v10 = vld [vmem:[#allocation5 + $0x108] sm:$0xff]  ;;  %1428 = vmatprep.subr.bf16.mxu0 %v521_v3  ;;  %v417_v14 = vld [vmem:[#allocation5 + $0x10] sm:$0xff]  ;;  %v522_v16 = vpack.c.bf16 %v434_v13, %v433_v11  ;;  %s2358_s20 = scalar_lea.vmem [#allocation7], %s1643_s17   ;;  %s1116_s23 = smul.u32 (%p2502_p6), 13, %s2036_s4 }
  0x6c   : > { %v529_v12 = vpack.c.bf16 %v448_v10, %v447_v9  ;;  %v418_v15 = vld [vmem:[#allocation5 + $0x18] sm:$0xff]  ;;  %1429 = vmatpush3.bf16.msra.mxu0 %v513_v7  ;;  %v465_v18 = vld [vmem:[#allocation5 + $0x190] sm:$0xff]  ;;  %v435_v23 = vld [vmem:[#allocation5 + $0xa0] sm:$0xff]  ;;  %s1427_s25 = smul.u32 (%p2502_p6), 104, %s2036_s4 }
  0x6d   : > { %1486 = vmatprep.subr.bf16.mxu1 %v537_v8  ;;  %v514_v17 = vpack.c.bf16 %v418_v15, %v417_v14  ;;  %v466_v19 = vld [vmem:[#allocation5 + $0x198] sm:$0xff]  ;;  %v449_v20 = vld [vmem:[#allocation5 + $0x110] sm:$0xff]  ;;  %v436_v24 = vld [vmem:[#allocation5 + $0xa8] sm:$0xff]  ;;  %1430 = vmatprep.subr.bf16.mxu0 %v522_v16  ;;  %s1117_s26 = ssub.s32 (%p2502_p6), 25, %s1116_s23 }
  0x6e   : > { %1487 = vmatpush3.bf16.msra.mxu1 %v529_v12  ;;  %v538_v21 = vpack.c.bf16 %v466_v19, %v465_v18  ;;  %v450_v22 = vld [vmem:[#allocation5 + $0x118] sm:$0xff]  ;;  %v523_v26 = vpack.c.bf16 %v436_v24, %v435_v23  ;;  %v419_v27 = vld [vmem:[#allocation5 + $0x20] sm:$0xff]  ;;  %v420_v28 = vld [vmem:[#allocation5 + $0x28] sm:$0xff]  ;;  %p1118_p7 = scmp.lt.s32.totalorder (%p2502_p6), %s1117_s26, 13  ;;  %s2398_s11 = scalar_lea.vmem (%p2502_p6), %s2488_s5, %s1427_s25  }
  0x6f   : > { %v530_v25 = vpack.c.bf16 %v450_v22, %v449_v20  ;;  %v467_v29 = vld [vmem:[#allocation5 + $0x1a0] sm:$0xff]  ;;  %v468_v30 = vld [vmem:[#allocation5 + $0x1a8] sm:$0xff]  ;;  %v515_v33 = vpack.c.bf16 %v420_v28, %v419_v27  ;;  %v437_v35 = vld [vmem:[#allocation5 + $0xb0] sm:$0xff] }
  0x70   : > { %1488 = vmatprep.subr.bf16.mxu1 %v538_v21  ;;  %v451_v31 = vld [vmem:[#allocation5 + $0x120] sm:$0xff]  ;;  %v452_v32 = vld [vmem:[#allocation5 + $0x128] sm:$0xff]  ;;  %1431 = vmatpush3.bf16.msra.mxu0 %v514_v17  ;;  %v539_v34 = vpack.c.bf16 %v468_v30, %v467_v29  ;;  %v438_v36 = vld [vmem:[#allocation5 + $0xb8] sm:$0xff] }
  0x71   : > { %v421_v37 = vld [vmem:[#allocation5 + $0x30] sm:$0xff]  ;;  %1432 = vmatprep.subr.bf16.mxu0 %v523_v26  ;;  %v531_v38 = vpack.c.bf16 %v452_v32, %v451_v31  ;;  %v524_v39 = vpack.c.bf16 %v438_v36, %v437_v35  ;;  %v422_v40 = vld [vmem:[#allocation5 + $0x38] sm:$0xff]  ;;  %v439_v46 = vld [vmem:[#allocation5 + $0xc0] sm:$0xff] }
  0x72   : > { %1489 = vmatpush3.bf16.msra.mxu1 %v530_v25  ;;  %v469_v41 = vld [vmem:[#allocation5 + $0x1b0] sm:$0xff]  ;;  %v470_v42 = vld [vmem:[#allocation5 + $0x1b8] sm:$0xff]  ;;  %v440_v47 = vld [vmem:[#allocation5 + $0xc8] sm:$0xff]  ;;  %v516_v48 = vpack.c.bf16 %v422_v40, %v421_v37 }
  0x73   : > { %1490 = vmatprep.subr.bf16.mxu1 %v539_v34  ;;  %v540_v43 = vpack.c.bf16 %v470_v42, %v469_v41  ;;  %v453_v44 = vld [vmem:[#allocation5 + $0x130] sm:$0xff]  ;;  %v454_v45 = vld [vmem:[#allocation5 + $0x138] sm:$0xff]  ;;  %v471_v49 = vld [vmem:[#allocation5 + $0x1c0] sm:$0xff]  ;;  %v525_v52 = vpack.c.bf16 %v440_v47, %v439_v46 }
  0x74   : > { %1433 = vmatpush3.bf16.msra.mxu0 %v515_v33  ;;  %v472_v50 = vld [vmem:[#allocation5 + $0x1c8] sm:$0xff]  ;;  %v532_v51 = vpack.c.bf16 %v454_v45, %v453_v44  ;;  %v423_v53 = vld [vmem:[#allocation5 + $0x40] sm:$0xff]  ;;  %v441_v58 = vld [vmem:[#allocation5 + $0xd0] sm:$0xff] }
  0x75   : > { %1434 = vmatprep.subr.bf16.mxu0 %v524_v39  ;;  %v424_v54 = vld [vmem:[#allocation5 + $0x48] sm:$0xff]  ;;  %v455_v55 = vld [vmem:[#allocation5 + $0x140] sm:$0xff]  ;;  %v541_v56 = vpack.c.bf16 %v472_v50, %v471_v49  ;;  %v442_v59 = vld [vmem:[#allocation5 + $0xd8] sm:$0xff] }
  0x76   : > { %1491 = vmatpush3.bf16.msra.mxu1 %v531_v38  ;;  %v456_v57 = vld [vmem:[#allocation5 + $0x148] sm:$0xff]  ;;  %v473_v60 = vld [vmem:[#allocation5 + $0x1d0] sm:$0xff]  ;;  %v474_v61 = vld [vmem:[#allocation5 + $0x1d8] sm:$0xff]  ;;  %v517_v62 = vpack.c.bf16 %v424_v54, %v423_v53  ;;  %v526_v0 = vpack.c.bf16 %v442_v59, %v441_v58 }
  0x77   : > { %1492 = vmatprep.subr.bf16.mxu1 %v540_v43  ;;  %v533_v63 = vpack.c.bf16 %v456_v57, %v455_v55  ;;  %v425_v1 = vld [vmem:[#allocation5 + $0x50] sm:$0xff]  ;;  %v426_v2 = vld [vmem:[#allocation5 + $0x58] sm:$0xff]  ;;  %v542_v4 = vpack.c.bf16 %v474_v61, %v473_v60  ;;  %v443_v6 = vld [vmem:[#allocation5 + $0xe0] sm:$0xff] }
  0x78   : > { %1435 = vmatpush3.bf16.msra.mxu0 %v516_v48  ;;  %v457_v3 = vld [vmem:[#allocation5 + $0x150] sm:$0xff]  ;;  %v458_v5 = vld [vmem:[#allocation5 + $0x158] sm:$0xff]  ;;  %v444_v7 = vld [vmem:[#allocation5 + $0xe8] sm:$0xff]  ;;  %v518_v10 = vpack.c.bf16 %v426_v2, %v425_v1 }
  0x79   : > { %1436 = vmatprep.subr.bf16.mxu0 %v525_v52  ;;  %v475_v8 = vld [vmem:[#allocation5 + $0x1e0] sm:$0xff]  ;;  %v476_v9 = vld [vmem:[#allocation5 + $0x1e8] sm:$0xff]  ;;  %v276_v13 = vld [vmem:[%s2149_s19 + $0x8] sm:$0xff]  ;;  %v534_v14 = vpack.c.bf16 %v458_v5, %v457_v3  ;;  %v527_v15 = vpack.c.bf16 %v444_v7, %v443_v6 }
  0x7a   : > { %1493 = vmatpush3.bf16.msra.mxu1 %v532_v51  ;;  %v427_v11 = vld [vmem:[#allocation5 + $0x60] sm:$0xff]  ;;  %v428_v12 = vld [vmem:[#allocation5 + $0x68] sm:$0xff]  ;;  %v543_v19 = vpack.c.bf16 %v476_v9, %v475_v8  ;;  %v445_v20 = vld [vmem:[#allocation5 + $0xf0] sm:$0xff] }
  0x7b   : > { %1494 = vmatprep.subr.bf16.mxu1 %v541_v56  ;;  %v459_v16 = vld [vmem:[#allocation5 + $0x160] sm:$0xff]  ;;  %v460_v17 = vld [vmem:[#allocation5 + $0x168] sm:$0xff]  ;;  %v446_v21 = vld [vmem:[#allocation5 + $0xf8] sm:$0xff]  ;;  %v519_v27 = vpack.c.bf16 %v428_v12, %v427_v11 }
  0x7c   : > { %1437 = vmatpush3.bf16.msra.mxu0 %v517_v62  ;;  %v283_v18 = vld [vmem:[%s2149_s19 + $0x40] sm:$0xff]  ;;  %v478_v24 = vld [vmem:[#allocation5 + $0x1f8] sm:$0xff]  ;;  %v278_v25 = vld [vmem:[%s2149_s19 + $0x18] sm:$0xff]  ;;  %v535_v29 = vpack.c.bf16 %v460_v17, %v459_v16  ;;  %v528_v30 = vpack.c.bf16 %v446_v21, %v445_v20  ;;  %v1982_v62 = vmov 0.0  }
  0x7d   : > { %1438 = vmatprep.subr.bf16.mxu0 %v526_v0  ;;  %v477_v22 = vld [vmem:[#allocation5 + $0x1f0] sm:$0xff]  ;;  %v367_v23 = vpack.c.bf16 %v283_v18, %v276_v13  ;;  %v285_v26 = vld [vmem:[%s2149_s19 + $0x50] sm:$0xff]  ;;  %v496_v37 = vld [vmem:[#allocation5 + $0x288] sm:$0xff] }
  0x7e   : > { %1495 = vmatpush3.bf16.msra.mxu1 %v533_v63  ;;  %v369_v28 = vpack.c.bf16 %v285_v26, %v278_v25  ;;  %v429_v31 = vld [vmem:[#allocation5 + $0x70] sm:$0xff]  ;;  %v430_v32 = vld [vmem:[#allocation5 + $0x78] sm:$0xff]  ;;  %v544_v34 = vpack.c.bf16 %v478_v24, %v477_v22  ;;  %v495_v36 = vld [vmem:[#allocation5 + $0x280] sm:$0xff] }
  0x7f   : > { %1496 = vmatprep.subr.bf16.mxu1 %v542_v4  ;;  %623 = vmatprep.mubr.bf16.mxu0 %v367_v23  ;;  %v461_v33 = vld [vmem:[#allocation5 + $0x170] sm:$0xff]  ;;  %v462_v35 = vld [vmem:[#allocation5 + $0x178] sm:$0xff]  ;;  %v282_v39 = vld [vmem:[%s2149_s19 + $0x38] sm:$0xff]  ;;  %v520_v40 = vpack.c.bf16 %v430_v32, %v429_v31  ;;  %v553_v45 = vpack.c.bf16 %v496_v37, %v495_v36 }
  0x80   : > { %1439 = vmatpush3.bf16.msra.mxu0 %v518_v10  ;;  %711 = vmatprep.mubr.bf16.mxu1 %v369_v28  ;;  %v275_v38 = vld [vmem:[%s2149_s19] sm:$0xff]  ;;  %v479_v41 = vld [vmem:[#allocation5 + $0x200] sm:$0xff]  ;;  %v536_v44 = vpack.c.bf16 %v462_v35, %v461_v33  ;;  %v284_v46 = vld [vmem:[%s2149_s19 + $0x48] sm:$0xff] }
  0x81   : > { %1440 = vmatprep.subr.bf16.mxu0 %v527_v15  ;;  %v480_v42 = vld [vmem:[#allocation5 + $0x208] sm:$0xff]  ;;  %v277_v43 = vld [vmem:[%s2149_s19 + $0x10] sm:$0xff]  ;;  %v497_v51 = vld [vmem:[#allocation5 + $0x290] sm:$0xff]  ;;  %v366_v52 = vpack.c.bf16 %v282_v39, %v275_v38 }
  0x82   : > { %1497 = vmatpush3.bf16.msra.mxu1 %v534_v14  ;;  %v511_v47 = vld [vmem:[#allocation5 + $0x300] sm:$0xff]  ;;  %v512_v48 = vld [vmem:[#allocation5 + $0x308] sm:$0xff]  ;;  %v498_v53 = vld [vmem:[#allocation5 + $0x298] sm:$0xff]  ;;  %v545_v56 = vpack.c.bf16 %v480_v42, %v479_v41  ;;  %v368_v57 = vpack.c.bf16 %v284_v46, %v277_v43 }
  0x83   : > { %1498 = vmatprep.subr.bf16.mxu1 %v543_v19  ;;  %v290_v49 = vld [vmem:[%s2149_s19 + $0x78] sm:$0xff]  ;;  %v297_v50 = vld [vmem:[%s2149_s19 + $0xb0] sm:$0xff]  ;;  %v292_v54 = vld [vmem:[%s2149_s19 + $0x88] sm:$0xff]  ;;  %v561_v58 = vpack.c.bf16 %v512_v48, %v511_v47  ;;  %v554_v63 = vpack.c.bf16 %v498_v53, %v497_v51 }
  0x84   : > { %1441 = vmatpush3.bf16.msra.mxu0 %v519_v27  ;;  %v299_v55 = vld [vmem:[%s2149_s19 + $0xc0] sm:$0xff]  ;;  %v374_v59 = vpack.c.bf16 %v297_v50, %v290_v49  ;;  %v482_v61 = vld [vmem:[#allocation5 + $0x218] sm:$0xff]  ;;  %v499_v1 = vld [vmem:[#allocation5 + $0x2a0] sm:$0xff] }
  0x85   : > { %1442 = vmatprep.subr.bf16.mxu0 %v528_v30  ;;  %v481_v60 = vld [vmem:[#allocation5 + $0x210] sm:$0xff]  ;;  %v376_v0 = vpack.c.bf16 %v299_v55, %v292_v54  ;;  %v500_v2 = vld [vmem:[#allocation5 + $0x2a8] sm:$0xff]  ;;  %v289_v3 = vld [vmem:[%s2149_s19 + $0x70] sm:$0xff] }
  0x86   : > { %1499 = vmatpush3.bf16.msra.mxu1 %v535_v29  ;;  %v296_v4 = vld [vmem:[%s2149_s19 + $0xa8] sm:$0xff]  ;;  %v546_v5 = vpack.c.bf16 %v482_v61, %v481_v60  ;;  %v291_v6 = vld [vmem:[%s2149_s19 + $0x80] sm:$0xff]  ;;  %v298_v7 = vld [vmem:[%s2149_s19 + $0xb8] sm:$0xff]  ;;  %v555_v8 = vpack.c.bf16 %v500_v2, %v499_v1 }
  0x87   : > { %1500 = vmatprep.subr.bf16.mxu1 %v544_v34  ;;  %v304_v9 = vld [vmem:[%s2149_s19 + $0xe8] sm:$0xff]  ;;  %v311_v10 = vld [vmem:[%s2149_s19 + $0x120] sm:$0xff]  ;;  %v483_v11 = vld [vmem:[#allocation5 + $0x220] sm:$0xff]  ;;  %v373_v15 = vpack.c.bf16 %v296_v4, %v289_v3  ;;  %v375_v18 = vpack.c.bf16 %v298_v7, %v291_v6 }
  0x88   : > { %1443 = vmatpush3.bf16.msra.mxu0 %v520_v40  ;;  %v484_v12 = vld [vmem:[#allocation5 + $0x228] sm:$0xff]  ;;  %v313_v14 = vld [vmem:[%s2149_s19 + $0x130] sm:$0xff]  ;;  %v501_v16 = vld [vmem:[#allocation5 + $0x2b0] sm:$0xff]  ;;  %v381_v19 = vpack.c.bf16 %v311_v10, %v304_v9 }
  0x89   : > { %1544 = vmatprep.subr.bf16.mxu0 %v553_v45  ;;  %v306_v13 = vld [vmem:[%s2149_s19 + $0xf8] sm:$0xff]  ;;  %v502_v17 = vld [vmem:[#allocation5 + $0x2b8] sm:$0xff]  ;;  %v547_v20 = vpack.c.bf16 %v484_v12, %v483_v11  ;;  %v485_v23 = vld [vmem:[#allocation5 + $0x230] sm:$0xff] }
  0x8a   : > { %1501 = vmatpush3.bf16.msra.mxu1 %v536_v44  ;;  %v383_v21 = vpack.c.bf16 %v313_v14, %v306_v13  ;;  %v556_v22 = vpack.c.bf16 %v502_v17, %v501_v16  ;;  %v486_v24 = vld [vmem:[#allocation5 + $0x238] sm:$0xff]  ;;  %v303_v25 = vld [vmem:[%s2149_s19 + $0xe0] sm:$0xff]  ;;  %v503_v26 = vld [vmem:[#allocation5 + $0x2c0] sm:$0xff] }
  0x8b   : > { %1610 = vmatprep.subr.bf16.mxu1 %v1982_v62  ;;  %624 = vmatmul.mubr.bf16.vlgmr.msra.gmra.mrb[0].mxu0 %v366_v52  ;;  %v504_v27 = vld [vmem:[#allocation5 + $0x2c8] sm:$0xff]  ;;  %v305_v29 = vld [vmem:[%s2149_s19 + $0xf0] sm:$0xff]  ;;  %v312_v30 = vld [vmem:[%s2149_s19 + $0x128] sm:$0xff]  ;;  %v548_v31 = vpack.c.bf16 %v486_v24, %v485_v23 }
  0x8c   : > { %1545 = vmatpush3.bf16.msra.mxu0 %v545_v56  ;;  %631 = vmatprep.mubr.bf16.mxu0 %v374_v59  ;;  %v310_v28 = vld [vmem:[%s2149_s19 + $0x118] sm:$0xff]  ;;  %v325_v33 = vld [vmem:[%s2149_s19 + $0x190] sm:$0xff]  ;;  %v320_v34 = vld [vmem:[%s2149_s19 + $0x168] sm:$0xff]  ;;  %v557_v36 = vpack.c.bf16 %v504_v27, %v503_v26  ;;  %v382_v42 = vpack.c.bf16 %v312_v30, %v305_v29 }
  0x8d   : > { %712 = vmatmul.mubr.bf16.vlgmr.msra.gmra.mrb[0].mxu1 %v368_v57  ;;  %1546 = vmatprep.subr.bf16.mxu0 %v554_v63  ;;  %v318_v32 = vld [vmem:[%s2149_s19 + $0x158] sm:$0xff]  ;;  %v327_v35 = vld [vmem:[%s2149_s19 + $0x1a0] sm:$0xff]  ;;  %v380_v39 = vpack.c.bf16 %v310_v28, %v303_v25  ;;  %v506_v41 = vld [vmem:[#allocation5 + $0x2d8] sm:$0xff] }
  0x8e   : > { %1611 = vmatpush3.bf16.msra.mxu1 %v561_v58  ;;  %719 = vmatprep.mubr.bf16.mxu1 %v376_v0  ;;  %v487_v37 = vld [vmem:[#allocation5 + $0x240] sm:$0xff]  ;;  %v488_v38 = vld [vmem:[#allocation5 + $0x248] sm:$0xff]  ;;  %v505_v40 = vld [vmem:[#allocation5 + $0x2d0] sm:$0xff]  ;;  %v388_v43 = vpack.c.bf16 %v325_v33, %v318_v32  ;;  %v390_v44 = vpack.c.bf16 %v327_v35, %v320_v34 }
  0x8f   : > { %v549_v45 = vpack.c.bf16 %v488_v38, %v487_v37  ;;  %v558_v46 = vpack.c.bf16 %v506_v41, %v505_v40  ;;  %v489_v47 = vld [vmem:[#allocation5 + $0x250] sm:$0xff]  ;;  %v490_v48 = vld [vmem:[#allocation5 + $0x258] sm:$0xff]  ;;  %v507_v50 = vld [vmem:[#allocation5 + $0x2e0] sm:$0xff] }
  0x90   : > { %1547 = vmatpush3.bf16.msra.mxu0 %v546_v5  ;;  %v317_v49 = vld [vmem:[%s2149_s19 + $0x150] sm:$0xff]  ;;  %v508_v51 = vld [vmem:[#allocation5 + $0x2e8] sm:$0xff]  ;;  %v324_v52 = vld [vmem:[%s2149_s19 + $0x188] sm:$0xff]  ;;  %v550_v58 = vpack.c.bf16 %v490_v48, %v489_v47 }
  0x91   : > { %1548 = vmatprep.subr.bf16.mxu0 %v555_v8  ;;  %v319_v53 = vld [vmem:[%s2149_s19 + $0x160] sm:$0xff]  ;;  %v326_v54 = vld [vmem:[%s2149_s19 + $0x198] sm:$0xff]  ;;  %v332_v55 = vld [vmem:[%s2149_s19 + $0x1c8] sm:$0xff]  ;;  %v559_v60 = vpack.c.bf16 %v508_v51, %v507_v50  ;;  %v387_v0 = vpack.c.bf16 %v324_v52, %v317_v49 }
  0x92   : > { %v339_v56 = vld [vmem:[%s2149_s19 + $0x200] sm:$0xff]  ;;  %v334_v57 = vld [vmem:[%s2149_s19 + $0x1d8] sm:$0xff]  ;;  %v341_v59 = vld [vmem:[%s2149_s19 + $0x210] sm:$0xff]  ;;  %v389_v3 = vpack.c.bf16 %v326_v54, %v319_v53 }
  0x93   : > { %632 = vmatmul.mubr.bf16.gmra.mrb[4].mxu0 %v373_v15  ;;  %v491_v61 = vld [vmem:[#allocation5 + $0x260] sm:$0xff]  ;;  %v492_v63 = vld [vmem:[#allocation5 + $0x268] sm:$0xff]  ;;  %v509_v1 = vld [vmem:[#allocation5 + $0x2f0] sm:$0xff]  ;;  %v395_v4 = vpack.c.bf16 %v339_v56, %v332_v55  ;;  %v397_v5 = vpack.c.bf16 %v341_v59, %v334_v57 }
  0x94   : > { %639 = vmatprep.mubr.bf16.mxu0 %v381_v19  ;;  %1549 = vmatpush3.bf16.msra.mxu0 %v547_v20  ;;  %v510_v2 = vld [vmem:[#allocation5 + $0x2f8] sm:$0xff]  ;;  %v551_v6 = vpack.c.bf16 %v492_v63, %v491_v61  ;;  %v493_v8 = vld [vmem:[#allocation5 + $0x270] sm:$0xff]  ;;  %v338_v11 = vld [vmem:[%s2149_s19 + $0x1f8] sm:$0xff] }
  0x95   : > { %720 = vmatmul.mubr.bf16.gmra.mrb[4].mxu1 %v375_v18  ;;  %1550 = vmatprep.subr.bf16.mxu0 %v556_v22  ;;  %v560_v7 = vpack.c.bf16 %v510_v2, %v509_v1  ;;  %v494_v9 = vld [vmem:[#allocation5 + $0x278] sm:$0xff]  ;;  %v331_v10 = vld [vmem:[%s2149_s19 + $0x1c0] sm:$0xff]  ;;  %v346_v14 = vld [vmem:[%s2149_s19 + $0x238] sm:$0xff] }
  0x96   : > { %727 = vmatprep.mubr.bf16.mxu1 %v383_v21  ;;  %v333_v12 = vld [vmem:[%s2149_s19 + $0x1d0] sm:$0xff]  ;;  %v340_v13 = vld [vmem:[%s2149_s19 + $0x208] sm:$0xff]  ;;  %v552_v16 = vpack.c.bf16 %v494_v9, %v493_v8  ;;  %v355_v18 = vld [vmem:[%s2149_s19 + $0x280] sm:$0xff]  ;;  %v394_v19 = vpack.c.bf16 %v338_v11, %v331_v10 }
  0x97   : > { %v353_v15 = vld [vmem:[%s2149_s19 + $0x270] sm:$0xff]  ;;  %v348_v17 = vld [vmem:[%s2149_s19 + $0x248] sm:$0xff]  ;;  %v396_v20 = vpack.c.bf16 %v340_v13, %v333_v12  ;;  %v347_v25 = vld [vmem:[%s2149_s19 + $0x240] sm:$0xff] }
  0x98   : > { %1551 = vmatpush3.bf16.msra.mxu0 %v548_v31  ;;  %v402_v21 = vpack.c.bf16 %v353_v15, %v346_v14  ;;  %v404_v22 = vpack.c.bf16 %v355_v18, %v348_v17  ;;  %v345_v23 = vld [vmem:[%s2149_s19 + $0x230] sm:$0xff]  ;;  %v352_v24 = vld [vmem:[%s2149_s19 + $0x268] sm:$0xff]  ;;  %v354_v26 = vld [vmem:[%s2149_s19 + $0x278] sm:$0xff] }
  0x99   : > { %1552 = vmatprep.subr.bf16.mxu0 %v557_v36  ;;  %v360_v27 = vld [vmem:[%s2149_s19 + $0x2a8] sm:$0xff]  ;;  %v362_v28 = vld [vmem:[%s2149_s19 + $0x2b8] sm:$0xff]  ;;  %v401_v29 = vpack.c.bf16 %v352_v24, %v345_v23  ;;  %v403_v30 = vpack.c.bf16 %v354_v26, %v347_v25  ;;  %v359_v33 = vld [vmem:[%s2149_s19 + $0x2a0] sm:$0xff] }
  0x9a   : > { %v409_v31 = vpack.c.bf16 %v360_v27, %v360_v27  ;;  %v411_v32 = vpack.c.bf16 %v362_v28, %v362_v28  ;;  %v361_v34 = vld [vmem:[%s2149_s19 + $0x2b0] sm:$0xff]  ;;  %v280_v35 = vld [vmem:[%s2149_s19 + $0x28] sm:$0xff]  ;;  %v287_v36 = vld [vmem:[%s2149_s19 + $0x60] sm:$0xff]  ;;  %v408_v37 = vpack.c.bf16 %v359_v33, %v359_v33 }
  0x9b   : > { %640 = vmatmul.mubr.bf16.gmra.mrb[8].mxu0 %v380_v39  ;;  %v410_v38 = vpack.c.bf16 %v361_v34, %v361_v34  ;;  %v371_v39 = vpack.c.bf16 %v287_v36, %v280_v35  ;;  %v279_v40 = vld [vmem:[%s2149_s19 + $0x20] sm:$0xff]  ;;  %v286_v41 = vld [vmem:[%s2149_s19 + $0x58] sm:$0xff]  ;;  %v293_v49 = vld [vmem:[%s2149_s19 + $0x90] sm:$0xff] }
  0x9c   : > { %647 = vmatprep.mubr.bf16.mxu0 %v388_v43  ;;  %1553 = vmatpush3.bf16.msra.mxu0 %v549_v45  ;;  %v288_v43 = vld [vmem:[%s2149_s19 + $0x68] sm:$0xff]  ;;  %v301_v45 = vld [vmem:[%s2149_s19 + $0xd0] sm:$0xff]  ;;  %v295_v51 = vld [vmem:[%s2149_s19 + $0xa0] sm:$0xff] }
  0x9d   : > { %728 = vmatmul.mubr.bf16.gmra.mrb[8].mxu1 %v382_v42  ;;  %1554 = vmatprep.subr.bf16.mxu0 %v558_v46  ;;  %v281_v42 = vld [vmem:[%s2149_s19 + $0x30] sm:$0xff]  ;;  %v370_v46 = vpack.c.bf16 %v286_v41, %v279_v40  ;;  %v300_v50 = vld [vmem:[%s2149_s19 + $0xc8] sm:$0xff]  ;;  %v302_v52 = vld [vmem:[%s2149_s19 + $0xd8] sm:$0xff] }
  0x9e   : > { %735 = vmatprep.mubr.bf16.mxu1 %v390_v44  ;;  %v294_v44 = vld [vmem:[%s2149_s19 + $0x98] sm:$0xff]  ;;  %v372_v47 = vpack.c.bf16 %v288_v43, %v281_v42  ;;  %v308_v53 = vld [vmem:[%s2149_s19 + $0x108] sm:$0xff]  ;;  %v315_v54 = vld [vmem:[%s2149_s19 + $0x140] sm:$0xff]  ;;  %v377_v55 = vpack.c.bf16 %v300_v50, %v293_v49  ;;  %v379_v56 = vpack.c.bf16 %v302_v52, %v295_v51 }
  0x9f   : > { %v378_v48 = vpack.c.bf16 %v301_v45, %v294_v44  ;;  %v385_v57 = vpack.c.bf16 %v315_v54, %v308_v53  ;;  %v314_v59 = vld [vmem:[%s2149_s19 + $0x138] sm:$0xff]  ;;  %v316_v61 = vld [vmem:[%s2149_s19 + $0x148] sm:$0xff]  ;;  %v343_v9 = vld [vmem:[%s2149_s19 + $0x220] sm:$0xff] }
  0xa0   : > { %1555 = vmatpush3.bf16.msra.mxu0 %v550_v58  ;;  %v307_v58 = vld [vmem:[%s2149_s19 + $0x100] sm:$0xff]  ;;  %v322_v63 = vld [vmem:[%s2149_s19 + $0x178] sm:$0xff]  ;;  %v336_v8 = vld [vmem:[%s2149_s19 + $0x1e8] sm:$0xff] }
  0xa1   : > { %1556 = vmatprep.subr.bf16.mxu0 %v559_v60  ;;  %v309_v60 = vld [vmem:[%s2149_s19 + $0x110] sm:$0xff]  ;;  %v384_v1 = vpack.c.bf16 %v314_v59, %v307_v58  ;;  %v399_v12 = vpack.c.bf16 %v343_v9, %v336_v8  ;;  %v335_v13 = vld [vmem:[%s2149_s19 + $0x1e0] sm:$0xff]  ;;  %v342_v14 = vld [vmem:[%s2149_s19 + $0x218] sm:$0xff] }
  0xa2   : > { %v386_v2 = vpack.c.bf16 %v316_v61, %v309_v60  ;;  %v337_v15 = vld [vmem:[%s2149_s19 + $0x1f0] sm:$0xff]  ;;  %v350_v17 = vld [vmem:[%s2149_s19 + $0x258] sm:$0xff]  ;;  %v356_v23 = vld [vmem:[%s2149_s19 + $0x288] sm:$0xff] }
  0xa3   : > { %648 = vmatmul.mubr.bf16.gmra.mrb[12].mxu0 %v387_v0  ;;  %v329_v0 = vld [vmem:[%s2149_s19 + $0x1b0] sm:$0xff]  ;;  %v351_v24 = vld [vmem:[%s2149_s19 + $0x260] sm:$0xff]  ;;  %v358_v25 = vld [vmem:[%s2149_s19 + $0x298] sm:$0xff] }
  0xa4   : > { %655 = vmatprep.mubr.bf16.mxu0 %v395_v4  ;;  %1557 = vmatpush3.bf16.msra.mxu0 %v551_v6  ;;  %v321_v4 = vld [vmem:[%s2149_s19 + $0x170] sm:$0xff]  ;;  %v323_v6 = vld [vmem:[%s2149_s19 + $0x180] sm:$0xff]  ;;  %v364_v26 = vld [vmem:[%s2149_s19 + $0x2c8] sm:$0xff]  ;;  %v407_v28 = vpack.c.bf16 %v358_v25, %v351_v24 }
  0xa5   : > { %736 = vmatmul.mubr.bf16.gmra.mrb[12].mxu1 %v389_v3  ;;  %1558 = vmatprep.subr.bf16.mxu0 %v560_v7  ;;  %v392_v3 = vpack.c.bf16 %v329_v0, %v322_v63  ;;  %v330_v7 = vld [vmem:[%s2149_s19 + $0x1b8] sm:$0xff]  ;;  %v357_v18 = vld [vmem:[%s2149_s19 + $0x290] sm:$0xff]  ;;  %v2275_v35 = vld [vmem:[%s2485_s2] ss:$0 sm:$0xff] }
  0xa6   : > { %743 = vmatprep.mubr.bf16.mxu1 %v397_v5  ;;  %v328_v5 = vld [vmem:[%s2149_s19 + $0x1a8] sm:$0xff]  ;;  %v393_v11 = vpack.c.bf16 %v330_v7, %v323_v6 }
  0xa7   : > { %v391_v10 = vpack.c.bf16 %v328_v5, %v321_v4 }
  0xa8   : > { %1559 = vmatpush3.bf16.msra.mxu0 %v552_v16  ;;  %v344_v16 = vld [vmem:[%s2149_s19 + $0x228] sm:$0xff] }
  0xab   : > { %656 = vmatmul.mubr.bf16.gmra.mrb[16].mxu0 %v394_v19  ;;  %v398_v19 = vpack.c.bf16 %v342_v14, %v335_v13 }
  0xac   : > { %663 = vmatprep.mubr.bf16.mxu0 %v402_v21  ;;  %v406_v21 = vpack.c.bf16 %v357_v18, %v350_v17 }
  0xad   : > { %744 = vmatmul.mubr.bf16.gmra.mrb[16].mxu1 %v396_v20  ;;  %v400_v20 = vpack.c.bf16 %v344_v16, %v337_v15 }
  0xae   : > { %751 = vmatprep.mubr.bf16.mxu1 %v404_v22  ;;  %v349_v22 = vld [vmem:[%s2149_s19 + $0x250] sm:$0xff] }
  0xaf   : > { %v405_v27 = vpack.c.bf16 %v356_v23, %v349_v22 }
  0xb3   : > { %664 = vmatmul.mubr.bf16.gmra.mrb[20].mxu0 %v401_v29  ;;  %v413_v29 = vpack.c.bf16 %v364_v26, %v364_v26 }
  0xb4   : > { %671 = vmatprep.mubr.bf16.mxu0 %v409_v31  ;;  %v365_v31 = vld [vmem:[%s2149_s19 + $0x2d0] sm:$0xff] }
  0xb5   : > { %752 = vmatmul.mubr.bf16.gmra.mrb[20].mxu1 %v403_v30  ;;  %v363_v30 = vld [vmem:[%s2149_s19 + $0x2c0] sm:$0xff]  ;;  %v414_v33 = vpack.c.bf16 %v365_v31, %v365_v31 }
  0xb6   : > { %759 = vmatprep.mubr.bf16.mxu1 %v411_v32  ;;  %v412_v32 = vpack.c.bf16 %v363_v30, %v363_v30 }
  0xbb   : > { %672 = vmatmul.mubr.bf16.gmra.mrb[24].mxu0 %v408_v37 }
  0xbc   : > { %799 = vmatprep.mubr.bf16.mxu0 %v371_v39 }
  0xbd   : > { %760 = vmatmul.mubr.bf16.gmra.mrb[24].mxu1 %v410_v38 }
  0xbe   : > { %1612 = vmatprep.mubr.msk.bf16.mxu1 %vm1983_vm0, %v1982_v62 }
  0xc3   : > { %800 = vmatmul.mubr.bf16.vlgmr.msra.gmra.mrb[28].mxu0 %v370_v46 }
  0xc4   : > { %807 = vmatprep.mubr.bf16.mxu0 %v378_v48 }
  0xc5   : > { %1613 = vmatmul.mubr.msk.bf16.vlgmr.msra.gmra.mrb[28].mxu1 %vm569_vm1, %v372_v47 }
  0xc6   : > { %1616 = vmatprep.mubr.msk.bf16.mxu1 %vm1983_vm0, %v1982_v62 }
  0xcb   : > { %808 = vmatmul.mubr.bf16.gmra.mrb[32].mxu0 %v377_v55 }
  0xcc   : > { %815 = vmatprep.mubr.bf16.mxu0 %v385_v57 }
  0xcd   : > { %1617 = vmatmul.mubr.msk.bf16.gmra.mrb[32].mxu1 %vm569_vm1, %v379_v56 }
  0xce   : > { %1620 = vmatprep.mubr.msk.bf16.mxu1 %vm1983_vm0, %v1982_v62 }
  0xd3   : > { %816 = vmatmul.mubr.bf16.gmra.mrb[36].mxu0 %v384_v1 }
  0xd4   : > { %823 = vmatprep.mubr.bf16.mxu0 %v392_v3 }
  0xd5   : > { %1621 = vmatmul.mubr.msk.bf16.gmra.mrb[36].mxu1 %vm569_vm1, %v386_v2 }
  0xd6   : > { %1624 = vmatprep.mubr.msk.bf16.mxu1 %vm1983_vm0, %v1982_v62 }
  0xdb   : > { %824 = vmatmul.mubr.bf16.gmra.mrb[40].mxu0 %v391_v10 }
  0xdc   : > { %831 = vmatprep.mubr.bf16.mxu0 %v399_v12 }
  0xdd   : > { %1625 = vmatmul.mubr.msk.bf16.gmra.mrb[40].mxu1 %vm569_vm1, %v393_v11 }
  0xde   : > { %1628 = vmatprep.mubr.msk.bf16.mxu1 %vm1983_vm0, %v1982_v62 }
  0xe3   : > { %832 = vmatmul.mubr.bf16.gmra.mrb[44].mxu0 %v398_v19 }
  0xe4   : > { %839 = vmatprep.mubr.bf16.mxu0 %v406_v21 }
  0xe5   : > { %1629 = vmatmul.mubr.msk.bf16.gmra.mrb[44].mxu1 %vm569_vm1, %v400_v20 }
  0xe6   : > { %1632 = vmatprep.mubr.msk.bf16.mxu1 %vm1983_vm0, %v1982_v62 }
  0xeb   : > { %840 = vmatmul.mubr.bf16.gmra.mrb[48].mxu0 %v405_v27 }
  0xec   : > { %847 = vmatprep.mubr.bf16.mxu0 %v413_v29 }
  0xed   : > { %1633 = vmatmul.mubr.msk.bf16.gmra.mrb[48].mxu1 %vm569_vm1, %v407_v28 }
  0xee   : > { %1636 = vmatprep.mubr.msk.bf16.mxu1 %vm1983_vm0, %v1982_v62 }
  0xf3   : > { %848 = vmatmul.mubr.bf16.gmra.mrb[52].mxu0 %v412_v32 }
  0xf5   : > { %1637 = vmatmul.mubr.msk.bf16.gmra.mrb[52].mxu1 %vm569_vm1, %v414_v33 }
 0x15e   : > { %v1444_v34 = vpop.f32.mrb[0].mxu0 }
 0x15f   : > { %v1445_v36 = vpop.f32.mrb[1].mxu0 }
 0x160   : > { %v1502_v37 = vpop.f32.mrb[0].mxu1  ;;  %v1446_v38 = vadd.f32 %v1445_v36, %v1444_v34  ;;  %v1447_v39 = vpop.f32.mrb[2].mxu0 }
 0x161   : > { %v1503_v40 = vpop.f32.mrb[1].mxu1  ;;  %v1448_v41 = vpop.f32.mrb[3].mxu0 }
 0x162   : > { %v1504_v42 = vadd.f32 %v1503_v40, %v1502_v37  ;;  %v1505_v62 = vpop.f32.mrb[2].mxu1  ;;  %v626_v43 = vadd.f32 %v1446_v38, %v2275_v35  ;;  %v1449_v44 = vadd.f32 %v1448_v41, %v1447_v39 }
 0x163   : > { %v1506_v45 = vpop.f32.mrb[3].mxu1 }
 0x164   : > { %v1507_v46 = vadd.f32 %v1506_v45, %v1505_v62  ;;  %v629_v47 = vadd.f32 %v1449_v44, %v2275_v35  ;;  %v2279_v48 = vadd.f32 %v1504_v42, %v626_v43 }
 0x166   : > { %v2281_v49 = vadd.f32 %v1507_v46, %v629_v47  ;;  %v1450_v50 = vpop.f32.mrb[4].mxu0 }
 0x167   : > { %v1451_v51 = vpop.f32.mrb[5].mxu0 }
 0x168   : > { %v1508_v52 = vpop.f32.mrb[4].mxu1  ;;  %v1452_v53 = vadd.f32 %v1451_v51, %v1450_v50  ;;  %v1453_v54 = vpop.f32.mrb[6].mxu0 }
 0x169   : > { %v1509_v55 = vpop.f32.mrb[5].mxu1  ;;  %v1454_v56 = vpop.f32.mrb[7].mxu0 }
 0x16a   : > { %v1510_v57 = vadd.f32 %v1509_v55, %v1508_v52  ;;  %v1511_v58 = vpop.f32.mrb[6].mxu1  ;;  %v634_v59 = vadd.f32 %v1452_v53, %v2275_v35  ;;  %v1455_v60 = vadd.f32 %v1454_v56, %v1453_v54 }
 0x16b   : > { %v1512_v61 = vpop.f32.mrb[7].mxu1 }
 0x16c   : > { %v1513_v63 = vadd.f32 %v1512_v61, %v1511_v58  ;;  %v637_v0 = vadd.f32 %v1455_v60, %v2275_v35  ;;  %v2285_v1 = vadd.f32 %v1510_v57, %v634_v59 }
 0x16e   : > { %v2287_v2 = vadd.f32 %v1513_v63, %v637_v0  ;;  %v1456_v3 = vpop.f32.mrb[8].mxu0 }
 0x16f   : > { %v1457_v4 = vpop.f32.mrb[9].mxu0 }
 0x170   : > { %v1514_v5 = vpop.f32.mrb[8].mxu1  ;;  %v1458_v6 = vadd.f32 %v1457_v4, %v1456_v3  ;;  %v1459_v7 = vpop.f32.mrb[10].mxu0 }
 0x171   : > { %v1515_v8 = vpop.f32.mrb[9].mxu1  ;;  %v1460_v9 = vpop.f32.mrb[11].mxu0 }
 0x172   : > { %v1516_v10 = vadd.f32 %v1515_v8, %v1514_v5  ;;  %v1517_v11 = vpop.f32.mrb[10].mxu1  ;;  %v642_v12 = vadd.f32 %v1458_v6, %v2275_v35  ;;  %v1461_v13 = vadd.f32 %v1460_v9, %v1459_v7 }
 0x173   : > { %v1518_v14 = vpop.f32.mrb[11].mxu1 }
 0x174   : > { %v1519_v15 = vadd.f32 %v1518_v14, %v1517_v11  ;;  %v645_v16 = vadd.f32 %v1461_v13, %v2275_v35  ;;  %v2291_v17 = vadd.f32 %v1516_v10, %v642_v12 }
 0x176   : > { %v2293_v18 = vadd.f32 %v1519_v15, %v645_v16  ;;  %v1462_v19 = vpop.f32.mrb[12].mxu0 }
 0x177   : > { %v1463_v20 = vpop.f32.mrb[13].mxu0 }
 0x178   : > { %v1520_v21 = vpop.f32.mrb[12].mxu1  ;;  %v1464_v22 = vadd.f32 %v1463_v20, %v1462_v19  ;;  %v1465_v23 = vpop.f32.mrb[14].mxu0 }
 0x179   : > { %v1521_v24 = vpop.f32.mrb[13].mxu1  ;;  %v1466_v25 = vpop.f32.mrb[15].mxu0 }
 0x17a   : > { %v1522_v26 = vadd.f32 %v1521_v24, %v1520_v21  ;;  %v1523_v27 = vpop.f32.mrb[14].mxu1  ;;  %v650_v28 = vadd.f32 %v1464_v22, %v2275_v35  ;;  %v1467_v29 = vadd.f32 %v1466_v25, %v1465_v23 }
 0x17b   : > { %v1524_v30 = vpop.f32.mrb[15].mxu1 }
 0x17c   : > { %v1525_v31 = vadd.f32 %v1524_v30, %v1523_v27  ;;  %v653_v32 = vadd.f32 %v1467_v29, %v2275_v35  ;;  %v2297_v33 = vadd.f32 %v1522_v26, %v650_v28 }
 0x17e   : > { %v2299_v34 = vadd.f32 %v1525_v31, %v653_v32  ;;  %v1468_v36 = vpop.f32.mrb[16].mxu0 }
 0x17f   : > { %v1469_v37 = vpop.f32.mrb[17].mxu0 }
 0x180   : > { %v1526_v38 = vpop.f32.mrb[16].mxu1  ;;  %v1470_v39 = vadd.f32 %v1469_v37, %v1468_v36  ;;  %v1471_v40 = vpop.f32.mrb[18].mxu0 }
 0x181   : > { %v1527_v41 = vpop.f32.mrb[17].mxu1  ;;  %v1472_v42 = vpop.f32.mrb[19].mxu0 }
 0x182   : > { %v1528_v62 = vadd.f32 %v1527_v41, %v1526_v38  ;;  %v1529_v43 = vpop.f32.mrb[18].mxu1  ;;  %v658_v44 = vadd.f32 %v1470_v39, %v2275_v35  ;;  %v1473_v45 = vadd.f32 %v1472_v42, %v1471_v40  ;;  %v2321_v42 = vld [vmem:[%s2486_s3] ss:$0 sm:$0xff] }
 0x183   : > { %v1530_v46 = vpop.f32.mrb[19].mxu1 }
 0x184   : > { %v1531_v47 = vadd.f32 %v1530_v46, %v1529_v43  ;;  %v661_v50 = vadd.f32 %v1473_v45, %v2275_v35  ;;  %v2303_v51 = vadd.f32 %v1528_v62, %v658_v44 }
 0x186   : > { %v2305_v52 = vadd.f32 %v1531_v47, %v661_v50  ;;  %v1474_v53 = vpop.f32.mrb[20].mxu0 }
 0x187   : > { %v1475_v54 = vpop.f32.mrb[21].mxu0 }
 0x188   : > { %v1532_v55 = vpop.f32.mrb[20].mxu1  ;;  %v1476_v56 = vadd.f32 %v1475_v54, %v1474_v53  ;;  %v1477_v57 = vpop.f32.mrb[22].mxu0 }
 0x189   : > { %v1533_v58 = vpop.f32.mrb[21].mxu1  ;;  %v1478_v59 = vpop.f32.mrb[23].mxu0 }
 0x18a   : > { %v1534_v60 = vadd.f32 %v1533_v58, %v1532_v55  ;;  %v1535_v61 = vpop.f32.mrb[22].mxu1  ;;  %v666_v63 = vadd.f32 %v1476_v56, %v2275_v35  ;;  %v1479_v0 = vadd.f32 %v1478_v59, %v1477_v57 }
 0x18b   : > { %v1536_v3 = vpop.f32.mrb[23].mxu1 }
 0x18c   : > { %v1537_v4 = vadd.f32 %v1536_v3, %v1535_v61  ;;  %v669_v5 = vadd.f32 %v1479_v0, %v2275_v35  ;;  %v2309_v6 = vadd.f32 %v1534_v60, %v666_v63 }
 0x18e   : > { %v2311_v7 = vadd.f32 %v1537_v4, %v669_v5  ;;  %v1480_v8 = vpop.f32.mrb[24].mxu0 }
 0x18f   : > { %v1481_v9 = vpop.f32.mrb[25].mxu0 }
 0x190   : > { %v1538_v10 = vpop.f32.mrb[24].mxu1  ;;  %v1482_v11 = vadd.f32 %v1481_v9, %v1480_v8  ;;  %v1483_v12 = vpop.f32.mrb[26].mxu0 }
 0x191   : > { %v1539_v13 = vpop.f32.mrb[25].mxu1  ;;  %v1484_v14 = vpop.f32.mrb[27].mxu0 }
 0x192   : > { %v1540_v15 = vadd.f32 %v1539_v13, %v1538_v10  ;;  %v1541_v16 = vpop.f32.mrb[26].mxu1  ;;  %v674_v19 = vadd.f32 %v1482_v11, %v2275_v35 }
 0x193   : > { %v1542_v20 = vpop.f32.mrb[27].mxu1 }
 0x194   : > { %v2314_v21 = vadd.f32 %v1540_v15, %v674_v19 }
 0x196   : > { %v1560_v22 = vpop.f32.mrb[28].mxu0 }
 0x197   : > { %v1561_v23 = vpop.f32.mrb[29].mxu0 }
 0x198   : > { %v889_v24 = vpop.f32.mrb[28].mxu1  ;;  %v1562_v25 = vadd.f32 %v1561_v23, %v1560_v22  ;;  %v1563_v26 = vpop.f32.mrb[30].mxu0 }
 0x199   : > { %v1614_v27 = vpop.f32.mrb[29].mxu1  ;;  %v1564_v28 = vpop.f32.mrb[31].mxu0 }
 0x19a   : > { %v892_v29 = vpop.f32.mrb[30].mxu1  ;;  %v1565_v30 = vadd.f32 %v1564_v28, %v1563_v26  ;;  %v802_v31 = vadd.f32 %v1562_v25, %v2279_v48 }
 0x19b   : > { %v1615_v32 = vpop.f32.mrb[31].mxu1 }
 0x19c   : > { %v890_v36 = vadd.f32 %v889_v24, %v802_v31  ;;  %v805_v37 = vadd.f32 %v1565_v30, %v2281_v49 }
 0x19e   : > { %v943_v38 = vmul.f32 0.1, %v890_v36  ;;  %v893_v35 = vadd.f32 %v892_v29, %v805_v37  ;;  %v1566_v39 = vpop.f32.mrb[32].mxu0 }
 0x19f   : > { %v1567_v40 = vpop.f32.mrb[33].mxu0 }
 0x1a0   : > { %v897_v41 = vpop.f32.mrb[32].mxu1  ;;  %v944_v62 = vmul.f32 0.1, %v893_v35  ;;  %v1568_v43 = vadd.f32 %v1567_v40, %v1566_v39  ;;  %v1569_v44 = vpop.f32.mrb[34].mxu0  ;;  %v956_v46 = vmax.f32 %v890_v36, %v943_v38 }
 0x1a1   : > { %v1618_v45 = vpop.f32.mrb[33].mxu1  ;;  %v1570_v48 = vpop.f32.mrb[35].mxu0 }
 0x1a2   : > { %v900_v47 = vpop.f32.mrb[34].mxu1  ;;  %v957_v50 = vmax.f32 %v893_v35, %v944_v62  ;;  %v1571_v53 = vadd.f32 %v1570_v48, %v1569_v44  ;;  %v810_v49 = vadd.f32 %v1568_v43, %v2285_v1  ;;  %v976_v55 = vmul.f32 %v2321_v42, %v956_v46 }
 0x1a3   : > { %v1619_v54 = vpop.f32.mrb[35].mxu1 }
 0x1a4   : > { %v898_v56 = vadd.f32 %v897_v41, %v810_v49  ;;  %v813_v57 = vadd.f32 %v1571_v53, %v2287_v2  ;;  %989 = vadd.xlane.f32.xlu0 %v976_v55  ;;  %v977_v61 = vmul.f32 %v2321_v42, %v957_v50 }
 0x1a6   : > { %v945_v58 = vmul.f32 0.1, %v898_v56  ;;  %v901_v59 = vadd.f32 %v900_v47, %v813_v57  ;;  %v1572_v60 = vpop.f32.mrb[36].mxu0 }
 0x1a7   : > { %v1573_v63 = vpop.f32.mrb[37].mxu0 }
 0x1a8   : > { %v905_v0 = vpop.f32.mrb[36].mxu1  ;;  %v946_v3 = vmul.f32 0.1, %v901_v59  ;;  %v1574_v4 = vadd.f32 %v1573_v63, %v1572_v60  ;;  %v1575_v5 = vpop.f32.mrb[38].mxu0  ;;  %991 = vadd.xlane.f32.xlu0 %v977_v61  ;;  %v958_v1 = vmax.f32 %v898_v56, %v945_v58 }
 0x1a9   : > { %v1622_v8 = vpop.f32.mrb[37].mxu1  ;;  %v1576_v9 = vpop.f32.mrb[39].mxu0 }
 0x1aa   : > { %v908_v10 = vpop.f32.mrb[38].mxu1  ;;  %v959_v11 = vmax.f32 %v901_v59, %v946_v3  ;;  %v1577_v12 = vadd.f32 %v1576_v9, %v1575_v5  ;;  %v818_v2 = vadd.f32 %v1574_v4, %v2291_v17  ;;  %v978_v14 = vmul.f32 %v2321_v42, %v958_v1 }
 0x1ab   : > { %v1623_v13 = vpop.f32.mrb[39].mxu1 }
 0x1ac   : > { %v906_v15 = vadd.f32 %v905_v0, %v818_v2  ;;  %v821_v16 = vadd.f32 %v1577_v12, %v2293_v18  ;;  %993 = vadd.xlane.f32.xlu1 %v978_v14  ;;  %v979_v23 = vmul.f32 %v2321_v42, %v959_v11 }
 0x1ae   : > { %v947_v19 = vmul.f32 0.1, %v906_v15  ;;  %v909_v20 = vadd.f32 %v908_v10, %v821_v16  ;;  %v1578_v22 = vpop.f32.mrb[40].mxu0 }
 0x1af   : > { %v1579_v24 = vpop.f32.mrb[41].mxu0 }
 0x1b0   : > { %v913_v25 = vpop.f32.mrb[40].mxu1  ;;  %v960_v26 = vmax.f32 %v906_v15, %v947_v19  ;;  %v948_v27 = vmul.f32 0.1, %v909_v20  ;;  %v1580_v28 = vadd.f32 %v1579_v24, %v1578_v22  ;;  %v1581_v29 = vpop.f32.mrb[42].mxu0  ;;  %995 = vadd.xlane.f32.xlu1 %v979_v23 }
 0x1b1   : > { %v1626_v17 = vpop.f32.mrb[41].mxu1  ;;  %v1582_v30 = vpop.f32.mrb[43].mxu0 }
 0x1b2   : > { %v916_v31 = vpop.f32.mrb[42].mxu1  ;;  %v961_v32 = vmax.f32 %v909_v20, %v948_v27  ;;  %v1583_v36 = vadd.f32 %v1582_v30, %v1581_v29  ;;  %v826_v18 = vadd.f32 %v1580_v28, %v2297_v33  ;;  %v980_v38 = vmul.f32 %v2321_v42, %v960_v26 }
 0x1b3   : > { %v1627_v37 = vpop.f32.mrb[43].mxu1 }
 0x1b4   : > { %v914_v35 = vadd.f32 %v913_v25, %v826_v18  ;;  %v829_v39 = vadd.f32 %v1583_v36, %v2299_v34  ;;  %997 = vadd.xlane.f32.xlu0 %v980_v38  ;;  %v981_v40 = vmul.f32 %v2321_v42, %v961_v32 }
 0x1b6   : > { %v949_v41 = vmul.f32 0.1, %v914_v35  ;;  %v917_v62 = vadd.f32 %v916_v31, %v829_v39  ;;  %v1584_v43 = vpop.f32.mrb[44].mxu0  ;;  %999 = vadd.xlane.f32.xlu1 %v981_v40  ;;  %v2347_v40 = vstv %s1015_s14 }
 0x1b7   : > { %v1585_v44 = vpop.f32.mrb[45].mxu0 }
 0x1b8   : > { %v921_v45 = vpop.f32.mrb[44].mxu1  ;;  %v962_v46 = vmax.f32 %v914_v35, %v949_v41  ;;  %v950_v48 = vmul.f32 0.1, %v917_v62  ;;  %v1586_v47 = vadd.f32 %v1585_v44, %v1584_v43  ;;  %v1587_v50 = vpop.f32.mrb[46].mxu0 }
 0x1b9   : > { %v1630_v33 = vpop.f32.mrb[45].mxu1  ;;  %v1588_v53 = vpop.f32.mrb[47].mxu0 }
 0x1ba   : > { %v924_v49 = vpop.f32.mrb[46].mxu1  ;;  %v963_v54 = vmax.f32 %v917_v62, %v950_v48  ;;  %v1589_v55 = vadd.f32 %v1588_v53, %v1587_v50  ;;  %v834_v34 = vadd.f32 %v1586_v47, %v2303_v51  ;;  %v982_v57 = vmul.f32 %v2321_v42, %v962_v46 }
 0x1bb   : > { %v1631_v56 = vpop.f32.mrb[47].mxu1 }
 0x1bc   : > { %v922_v58 = vadd.f32 %v921_v45, %v834_v34  ;;  %v837_v59 = vadd.f32 %v1589_v55, %v2305_v52  ;;  %1001 = vadd.xlane.f32.xlu0 %v982_v57  ;;  %v983_v60 = vmul.f32 %v2321_v42, %v963_v54 }
 0x1be   : > { %v951_v61 = vmul.f32 0.1, %v922_v58  ;;  %v925_v63 = vadd.f32 %v924_v49, %v837_v59  ;;  %v1590_v0 = vpop.f32.mrb[48].mxu0  ;;  %1003 = vadd.xlane.f32.xlu1 %v983_v60 }
 0x1bf   : > { %v1591_v3 = vpop.f32.mrb[49].mxu0 }
 0x1c0   : > { %v929_v4 = vpop.f32.mrb[48].mxu1  ;;  %v964_v5 = vmax.f32 %v922_v58, %v951_v61  ;;  %v952_v8 = vmul.f32 0.1, %v925_v63  ;;  %v1592_v1 = vadd.f32 %v1591_v3, %v1590_v0  ;;  %v1593_v9 = vpop.f32.mrb[50].mxu0 }
 0x1c1   : > { %v1634_v51 = vpop.f32.mrb[49].mxu1  ;;  %v1594_v10 = vpop.f32.mrb[51].mxu0 }
 0x1c2   : > { %v932_v11 = vpop.f32.mrb[50].mxu1  ;;  %v965_v12 = vmax.f32 %v925_v63, %v952_v8  ;;  %v1595_v2 = vadd.f32 %v1594_v10, %v1593_v9  ;;  %v842_v52 = vadd.f32 %v1592_v1, %v2309_v6  ;;  %v984_v14 = vmul.f32 %v2321_v42, %v964_v5 }
 0x1c3   : > { %v1635_v13 = vpop.f32.mrb[51].mxu1 }
 0x1c4   : > { %v930_v15 = vadd.f32 %v929_v4, %v842_v52  ;;  %v845_v16 = vadd.f32 %v1595_v2, %v2311_v7  ;;  %1005 = vadd.xlane.f32.xlu0 %v984_v14  ;;  %v985_v19 = vmul.f32 %v2321_v42, %v965_v12 }
 0x1c6   : > { %v953_v20 = vmul.f32 0.1, %v930_v15  ;;  %v933_v22 = vadd.f32 %v932_v11, %v845_v16  ;;  %v1596_v23 = vpop.f32.mrb[52].mxu0  ;;  %1007 = vadd.xlane.f32.xlu1 %v985_v19 }
 0x1c7   : > { %v1597_v24 = vpop.f32.mrb[53].mxu0 }
 0x1c8   : > { %v937_v25 = vpop.f32.mrb[52].mxu1  ;;  %v966_v26 = vmax.f32 %v930_v15, %v953_v20  ;;  %v954_v27 = vmul.f32 0.1, %v933_v22  ;;  %v1598_v28 = vadd.f32 %v1597_v24, %v1596_v23  ;;  %v1599_v29 = vpop.f32.mrb[54].mxu0 }
 0x1c9   : > { %v1638_v6 = vpop.f32.mrb[53].mxu1  ;;  %v1600_v17 = vpop.f32.mrb[55].mxu0 }
 0x1ca   : > { %v940_v30 = vpop.f32.mrb[54].mxu1  ;;  %v967_v31 = vmax.f32 %v933_v22, %v954_v27  ;;  %v850_v32 = vadd.f32 %v1598_v28, %v2314_v21  ;;  %v986_v36 = vmul.f32 %v2321_v42, %v966_v26 }
 0x1cb   : > { %v1639_v7 = vpop.f32.mrb[55].mxu1 }
 0x1cc   : > { %v938_v18 = vadd.f32 %v937_v25, %v850_v32  ;;  %1009 = vadd.xlane.f32.xlu0 %v986_v36  ;;  %v987_v37 = vmul.f32 %v2321_v42, %v967_v31 }
 0x1ce   : > { %v955_v38 = vmul.f32 0.1, %v938_v18  ;;  %1011 = vadd.xlane.f32.xlu1 %v987_v37 }
 0x1d0   : > { %v968_v35 = vmax.f32 %v938_v18, %v955_v38 }
 0x1d2   : > { %v988_v39 = vmul.f32 %v2321_v42, %v968_v35 }
 0x1d4   : > { %1013 = vadd.xlane.f32.xlu0 %v988_v39 }
 0x231   : > { %v990_v41 = vpop.xlane.xlu0 %989 }
 0x232   : > { %v1017_v62 = vadd.f32 %v2347_v40, %v990_v41 }
 0x234   : > { %v1030_v21 = vsub.f32 0.0, %v1017_v62 }
 0x235   : > { %v992_v43 = vpop.xlane.xlu0 %991 }
 0x236   : > { %v1043_v44 = vmul.f32 1.442695, %v1030_v21  ;;  %v1018_v45 = vadd.f32 %v2347_v40, %v992_v43 }
 0x238   : > { %1760 = vpow2.f32 %v1043_v44  ;;  %v1031_v46 = vsub.f32 0.0, %v1018_v45 }
 0x239   : > { %v994_v48 = vpop.xlane.xlu1 %993 }
 0x23a   : > { %v1045_v47 = vmul.f32 1.442695, %v1031_v46  ;;  %v1019_v50 = vadd.f32 %v2347_v40, %v994_v48 }
 0x23c   : > { %1762 = vpow2.f32 %v1045_v47  ;;  %v1032_v42 = vsub.f32 0.0, %v1019_v50 }
 0x23d   : > { %v996_v33 = vpop.xlane.xlu1 %995 }
 0x23e   : > { %v1047_v53 = vmul.f32 1.442695, %v1032_v42  ;;  %v1020_v49 = vadd.f32 %v2347_v40, %v996_v33 }
 0x240   : > { %1764 = vpow2.f32 %v1047_v53  ;;  %v1033_v54 = vsub.f32 0.0, %v1020_v49 }
 0x241   : > { %v998_v55 = vpop.xlane.xlu0 %997 }
 0x242   : > { %v1761_v34 = vpop.eup %1760  ;;  %v1049_v56 = vmul.f32 1.442695, %v1033_v54  ;;  %v1021_v57 = vadd.f32 %v2347_v40, %v998_v55 }
 0x243   : > { %v1069_v58 = vadd.f32 1.0, %v1761_v34  ;;  %v1000_v59 = vpop.xlane.xlu1 %999 }
 0x244   : > { %1766 = vpow2.f32 %v1049_v56  ;;  %v1034_v60 = vsub.f32 0.0, %v1021_v57  ;;  %v1022_v61 = vadd.f32 %v2347_v40, %v1000_v59 }
 0x245   : > { %1768 = vrcp.f32 %v1069_v58 }
 0x246   : > { %v1763_v63 = vpop.eup %1762  ;;  %v1051_v0 = vmul.f32 1.442695, %v1034_v60  ;;  %v1035_v3 = vsub.f32 0.0, %v1022_v61 }
 0x247   : > { %v1070_v4 = vadd.f32 1.0, %v1763_v63 }
 0x248   : > { %1770 = vpow2.f32 %v1051_v0  ;;  %v1053_v5 = vmul.f32 1.442695, %v1035_v3 }
 0x249   : > { %1772 = vrcp.f32 %v1070_v4  ;;  %v1002_v8 = vpop.xlane.xlu0 %1001 }
 0x24a   : > { %v1765_v1 = vpop.eup %1764  ;;  %1774 = vpow2.f32 %v1053_v5  ;;  %v1023_v9 = vadd.f32 %v2347_v40, %v1002_v8 }
 0x24b   : > { %v1071_v51 = vadd.f32 1.0, %v1765_v1  ;;  %v1004_v10 = vpop.xlane.xlu1 %1003 }
 0x24c   : > { %v1036_v11 = vsub.f32 0.0, %v1023_v9  ;;  %v1024_v12 = vadd.f32 %v2347_v40, %v1004_v10 }
 0x24d   : > { %1776 = vrcp.f32 %v1071_v51 }
 0x24e   : > { %v1767_v2 = vpop.eup %1766  ;;  %v1055_v52 = vmul.f32 1.442695, %v1036_v11  ;;  %v1037_v13 = vsub.f32 0.0, %v1024_v12 }
 0x24f   : > { %v1769_v14 = vpop.eup %1768  ;;  %v1072_v15 = vadd.f32 1.0, %v1767_v2 }
 0x250   : > { %1096 = vst.msk [vmem:[%s2358_s20] sm:$0xff] %vm1095_vm2, %v1769_v14  ;;  %1778 = vpow2.f32 %v1055_v52  ;;  %v1057_v16 = vmul.f32 1.442695, %v1037_v13 }
 0x251   : > { %1780 = vrcp.f32 %v1072_v15  ;;  %v1006_v19 = vpop.xlane.xlu0 %1005 }
 0x252   : > { %v1771_v20 = vpop.eup %1770  ;;  %1782 = vpow2.f32 %v1057_v16  ;;  %v1025_v22 = vadd.f32 %v2347_v40, %v1006_v19 }
 0x253   : > { %v1773_v23 = vpop.eup %1772  ;;  %v1073_v24 = vadd.f32 1.0, %v1771_v20  ;;  %v1008_v25 = vpop.xlane.xlu1 %1007 }
 0x254   : > { %v1775_v26 = vpop.eup %1774  ;;  %1097 = vst.msk [vmem:[%s2358_s20 + $0x8] sm:$0xff] %vm1095_vm2, %v1773_v23  ;;  %v1038_v27 = vsub.f32 0.0, %v1025_v22  ;;  %v1026_v28 = vadd.f32 %v2347_v40, %v1008_v25 }
 0x255   : > { %1784 = vrcp.f32 %v1073_v24  ;;  %v1074_v29 = vadd.f32 1.0, %v1775_v26 }
 0x256   : > { %v1059_v6 = vmul.f32 1.442695, %v1038_v27  ;;  %v1039_v17 = vsub.f32 0.0, %v1026_v28 }
 0x257   : > { %v1777_v30 = vpop.eup %1776  ;;  %1786 = vrcp.f32 %v1074_v29 }
 0x258   : > { %1098 = vst.msk [vmem:[%s2358_s20 + $0x10] sm:$0xff] %vm1095_vm2, %v1777_v30  ;;  %1788 = vpow2.f32 %v1059_v6  ;;  %v1061_v31 = vmul.f32 1.442695, %v1039_v17 }
 0x259   : > { %v1010_v32 = vpop.xlane.xlu0 %1009 }
 0x25a   : > { %v1779_v7 = vpop.eup %1778  ;;  %1790 = vpow2.f32 %v1061_v31  ;;  %v1027_v36 = vadd.f32 %v2347_v40, %v1010_v32 }
 0x25b   : > { %v1781_v18 = vpop.eup %1780  ;;  %v1075_v37 = vadd.f32 1.0, %v1779_v7  ;;  %v1012_v38 = vpop.xlane.xlu1 %1011 }
 0x25c   : > { %v1783_v35 = vpop.eup %1782  ;;  %1099 = vst.msk [vmem:[%s2358_s20 + $0x18] sm:$0xff] %vm1095_vm2, %v1781_v18  ;;  %v1040_v39 = vsub.f32 0.0, %v1027_v36  ;;  %v1028_v41 = vadd.f32 %v2347_v40, %v1012_v38 }
 0x25d   : > { %1792 = vrcp.f32 %v1075_v37  ;;  %v1076_v62 = vadd.f32 1.0, %v1783_v35 }
 0x25e   : > { %v1063_v21 = vmul.f32 1.442695, %v1040_v39  ;;  %v1041_v43 = vsub.f32 0.0, %v1028_v41 }
 0x25f   : > { %v1785_v44 = vpop.eup %1784  ;;  %1794 = vrcp.f32 %v1076_v62 }
 0x260   : > { %1100 = vst.msk [vmem:[%s2358_s20 + $0x20] sm:$0xff] %vm1095_vm2, %v1785_v44  ;;  %1796 = vpow2.f32 %v1063_v21  ;;  %v1065_v45 = vmul.f32 1.442695, %v1041_v43 }
 0x261   : > { %v1787_v46 = vpop.eup %1786  ;;  %v1014_v48 = vpop.xlane.xlu0 %1013 }
 0x262   : > { %v1789_v47 = vpop.eup %1788  ;;  %1101 = vst.msk [vmem:[%s2358_s20 + $0x28] sm:$0xff] %vm1095_vm2, %v1787_v46  ;;  %1798 = vpow2.f32 %v1065_v45  ;;  %v1029_v50 = vadd.f32 %v2347_v40, %v1014_v48 }
 0x263   : > { %v1077_v42 = vadd.f32 1.0, %v1789_v47 }
 0x264   : > { %v1791_v33 = vpop.eup %1790  ;;  %v1042_v53 = vsub.f32 0.0, %v1029_v50 }
 0x265   : > { %1800 = vrcp.f32 %v1077_v42  ;;  %v1078_v49 = vadd.f32 1.0, %v1791_v33 }
 0x266   : > { %v1067_v54 = vmul.f32 1.442695, %v1042_v53 }
 0x267   : > { %v1793_v55 = vpop.eup %1792  ;;  %1802 = vrcp.f32 %v1078_v49 }
 0x268   : > { %1102 = vst.msk [vmem:[%s2358_s20 + $0x30] sm:$0xff] %vm1095_vm2, %v1793_v55  ;;  %1804 = vpow2.f32 %v1067_v54 }
 0x269   : > { %v1795_v34 = vpop.eup %1794 }
 0x26a   : > { %v1797_v56 = vpop.eup %1796  ;;  %1103 = vst.msk [vmem:[%s2358_s20 + $0x38] sm:$0xff] %vm1095_vm2, %v1795_v34 }
 0x26b   : > { %v1079_v40 = vadd.f32 1.0, %v1797_v56 }
 0x26c   : > { %v1799_v57 = vpop.eup %1798 }
 0x26d   : > { %1806 = vrcp.f32 %v1079_v40  ;;  %v1080_v58 = vadd.f32 1.0, %v1799_v57 }
 0x26f   : > { %v1801_v59 = vpop.eup %1800  ;;  %1808 = vrcp.f32 %v1080_v58 }
 0x270   : > { %1104 = vst.msk [vmem:[%s2358_s20 + $0x40] sm:$0xff] %vm1095_vm2, %v1801_v59 }
 0x271   : > { %v1803_v60 = vpop.eup %1802 }
 0x272   : > { %v1805_v61 = vpop.eup %1804  ;;  %1105 = vst.msk [vmem:[%s2358_s20 + $0x48] sm:$0xff] %vm1095_vm2, %v1803_v60 }
 0x273   : > { %v1081_v63 = vadd.f32 1.0, %v1805_v61 }
 0x275   : > { %1810 = vrcp.f32 %v1081_v63 }
 0x277   : > { %v1807_v0 = vpop.eup %1806 }
 0x278   : > { %1106 = vst.msk [vmem:[%s2358_s20 + $0x50] sm:$0xff] %vm1095_vm2, %v1807_v0 }
 0x279   : > { %v1809_v3 = vpop.eup %1808 }
 0x27a   : > { %1107 = vst.msk [vmem:[%s2358_s20 + $0x58] sm:$0xff] %vm1095_vm2, %v1809_v3  ;;  %1115 = sbr.rel (!%p2502_p6) target bundleno = 702 (0x2be), region = 52 }
 0x27f   : > { %v1811_v4 = vpop.eup %1810 }
 0x280   : > { %1108 = vst.msk [vmem:[%s2358_s20 + $0x60] sm:$0xff] %vm1095_vm2, %v1811_v4 }
 0x281   : > { %s2513_s26 = smov (!%p1118_p7, %s1117_s26), 13 }
 0x282   : > { %s1415_s9 = sshll.u32 %s2513_s26, 7 }
 0x283   : > { %p1418_p9 = scmp.eq.s32.totalorder %s1415_s9, 0 }
 0x284   : > { %1812 = sdivrem.u32 (!%p1418_p9), %s2513_s26, 13 }
 0x285   : > { %1126 = sbr.rel (%p1418_p9) target bundleno = 702 (0x2be), region = 56 }
 0x28d   : > { %s2404_s30 = spop.drf %1812 }
 0x28e   : > { %p1419_p12 = scmp.le.s32.totalorder %s2404_s30, 0 }
 0x28f   : > { %s2503_s4 = smov (!%p1419_p12), %s2398_s11  ;;  %s2504_s8 = smov (!%p1419_p12), %s2358_s20 }
 0x290   : > { %1339 = sbr.rel (%p1419_p12) target bundleno = 673 (0x2a1), region = 138  ;;  %s2413_s28 = smov (!%p1419_p12), 0  }
 0x291   : > { %s2415_s15 = smov (!%p1419_p12), 0  }
 0x297 LB: >> { %v1214_v5 = vld [vmem:[%s1950_s8] sm:$0xff]  ;;  %v1216_v8 = vld [vmem:[%s1950_s8 + $0x8] sm:$0xff]  ;;  %v1218_v1 = vld [vmem:[%s1950_s8 + $0x10] sm:$0xff]  ;;  %s1240_s16 = sadd.s32 1, %s1954_s28  ;;  %s1208_s15 = sadd.s32 1, %s1958_s15   ;;  %s1958_s15 = sphi %s2415_s15, %s1208_s15   ;;  %s1954_s28 = sphi %s2413_s28, %s2505_s28   ;;  %s1950_s8 = sphi %s2504_s8, %s1245_s8   ;;  %s1946_s4 = sphi %s2503_s4, %s1246_s4  }
 0x298   : >> { %1215 = vst [vmem:[%s1946_s4] sm:$0xff] %v1214_v5  ;;  %1217 = vst [vmem:[%s1946_s4 + $0x8] sm:$0xff] %v1216_v8  ;;  %v1220_v9 = vld [vmem:[%s1950_s8 + $0x18] sm:$0xff]  ;;  %v1222_v51 = vld [vmem:[%s1950_s8 + $0x20] sm:$0xff]  ;;  %p1241_p0 = scmp.ge.s32.totalorder %s1240_s16, %s2404_s30  ;;  %p1207_p2 = scmp.ge.s32.totalorder %s1208_s15, %s2404_s30 }
 0x299   : >> { %1219 = vst [vmem:[%s1946_s4 + $0x10] sm:$0xff] %v1218_v1  ;;  %v1224_v10 = vld [vmem:[%s1950_s8 + $0x28] sm:$0xff]  ;;  %1221 = vst [vmem:[%s1946_s4 + $0x18] sm:$0xff] %v1220_v9  ;;  %v1226_v11 = vld [vmem:[%s1950_s8 + $0x30] sm:$0xff] }
 0x29a   : >> { %1223 = vst [vmem:[%s1946_s4 + $0x20] sm:$0xff] %v1222_v51  ;;  %1225 = vst [vmem:[%s1946_s4 + $0x28] sm:$0xff] %v1224_v10  ;;  %v1228_v12 = vld [vmem:[%s1950_s8 + $0x38] sm:$0xff]  ;;  %v1230_v2 = vld [vmem:[%s1950_s8 + $0x40] sm:$0xff]  ;;  %s2515_s16 = smov (%p1241_p0, %s1240_s16), 0  ;;  %1210 = sbr.rel (!%p1207_p2) target bundleno = 663 (0x297), region = 144 }
 0x29b   : >> { %1227 = vst [vmem:[%s1946_s4 + $0x30] sm:$0xff] %v1226_v11  ;;  %1229 = vst [vmem:[%s1946_s4 + $0x38] sm:$0xff] %v1228_v12  ;;  %v1232_v52 = vld [vmem:[%s1950_s8 + $0x48] sm:$0xff]  ;;  %v1234_v13 = vld [vmem:[%s1950_s8 + $0x50] sm:$0xff]  ;;  %s1243_s18 = smul.u32 104, %s2515_s16  ;;  %s2505_s28 = smov %s2515_s16 }
 0x29c   : >> { %1231 = vst [vmem:[%s1946_s4 + $0x40] sm:$0xff] %v1230_v2  ;;  %v1236_v14 = vld [vmem:[%s1950_s8 + $0x58] sm:$0xff]  ;;  %1233 = vst [vmem:[%s1946_s4 + $0x48] sm:$0xff] %v1232_v52  ;;  %v1238_v15 = vld [vmem:[%s1950_s8 + $0x60] sm:$0xff] }
 0x29d   : >> { %1235 = vst [vmem:[%s1946_s4 + $0x50] sm:$0xff] %v1234_v13  ;;  %1237 = vst [vmem:[%s1946_s4 + $0x58] sm:$0xff] %v1236_v14  ;;  %s1245_s8 = scalar_lea.vmem %s2358_s20, %s1243_s18 [#allocation7]  }
 0x29e   : >> { %1239 = vst [vmem:[%s1946_s4 + $0x60] sm:$0xff] %v1238_v15  ;;  %s1246_s4 = scalar_lea.vmem %s2398_s11, %s1243_s18  }
 0x2a1 PF: > { %1814 = sdivrem.u32 %s2513_s26, 13 }
 0x2a2   : > { %s1420_s19 = smul.u32 104, %s2404_s30 }
 0x2a4   : > { %s1251_s29 = scalar_lea.vmem %s2358_s20, %s1420_s19 [#allocation7]   ;;  %s1253_s6 = scalar_lea.vmem %s2398_s11, %s1420_s19  }
 0x2aa   : > { %s1815_s12 = spop.drf %1814 }
 0x2ab   : > { %p1422_p4 = scmp.le.s32.totalorder %s1815_s12, 0 }
 0x2ac   : > { %s1960_s13 = smov (!%p1422_p4), %s1253_s6   ;;  %s1964_s14 = smov (!%p1422_p4), %s1251_s29  }
 0x2ad   : > { %1353 = sbr.rel (%p1422_p4) target bundleno = 702 (0x2be), region = 149  ;;  %s1968_s17 = smov (!%p1422_p4), 0  }
 0x2ae   : > { %s1972_s23 = smov (!%p1422_p4), 0  }
 0x2b4 LB: >> { %v1263_v16 = vld [vmem:[%s1966_s14] sm:$0xff]  ;;  %s1265_s25 = sadd.s32 1, %s1970_s17  ;;  %s1257_s23 = sadd.s32 1, %s1974_s23   ;;  %s1974_s23 = sphi %s1972_s23, %s1257_s23   ;;  %s1970_s17 = sphi %s1968_s17, %s1969_s17   ;;  %s1966_s14 = sphi %s1964_s14, %s1270_s14   ;;  %s1962_s13 = sphi %s1960_s13, %s1271_s13  }
 0x2b5   : >> { %1264 = vst [vmem:[%s1962_s13] sm:$0xff] %v1263_v16  ;;  %p1266_p8 = scmp.ge.s32.totalorder %s1265_s25, %s1815_s12  ;;  %p1256_p10 = scmp.ge.s32.totalorder %s1257_s23, %s1815_s12 }
 0x2b7   : >> { %s2517_s25 = smov (%p1266_p8, %s1265_s25), 0  ;;  %1259 = sbr.rel (!%p1256_p10) target bundleno = 692 (0x2b4), region = 155 }
 0x2b8   : >> { %s1423_s20 = sshll.u32 %s2517_s25, 3  ;;  %s1969_s17 = smov %s2517_s25  }
 0x2b9   : >> { %s1270_s14 = scalar_lea.vmem %s1251_s29, %s1423_s20 [#allocation7]   ;;  %s1271_s13 = scalar_lea.vmem %s1253_s6, %s1423_s20  }
 0x2be PF: > { %p17_p13 = scmp.ge.s32.totalorder %s2039_s24, 4   ;;  %s2506_s20 = smov %s1934_s21 }
 0x2bf   : > { %s2507_s21 = smov %s1938_s22  ;;  %s2508_s22 = smov %s2049_s27 }
 0x2c0   : > { %s2509_s23 = smov %s2039_s24  ;;  %19 = sbr.rel (!%p17_p13) target bundleno = 6 (0x6), region = 166 }
 0x2c7   :  { %1287 = vsyncpa [#allocation4], 1 }
 0x2c8   :  { %1289 = vsyncpa [#allocation4 + $0x1], 1 }
 0x2c9   :  { %1290 = vsyncpa [#allocation6], 1 }

</bundles_post_ra>
